<compile_context>
chip_gen: v7x
topology: tpu7x:2x2x1
jax: 0.10.0
libtpu: 0.0.40
codegen_flags: <defaults>
</compile_context>

<pallas_src>
import functools

import jax
import jax.numpy as jnp
import numpy as np
from jax.experimental import pallas as pl
from jax.experimental.pallas import tpu as pltpu


# ----------------------------- Pallas kernel ------------------------------ #

def _downsample_kernel(x_ref, w_ref, scale_ref, bias_ref, o_ref, *,
                       BT, HP2, OH, OW, C_IN, C_OUT, slope):
    """One batch tile.

    x_ref    : (BT, 4*HP2, WP2, C_IN)  phase-split, reflect-padded input:
               x_ref[b, p*HP2 + a, c, ci] == x_pad[b, 2a + p//2, 2c + p%2, ci]
    w_ref    : (3, 3, C_IN, C_OUT)     conv weight, HWIO layout
    scale_ref: (1, C_OUT)              folded BN scale  = gamma / sqrt(var + eps)
    bias_ref : (1, C_OUT)              folded BN bias   = beta - mean * scale
    o_ref    : (BT*OH*OW, C_OUT)       output rows (b, oh, ow) x channels-in-lanes
    """
    acc = jnp.zeros((BT * OH * OW, C_OUT), jnp.float32)       # lives in vregs
    for ki in range(3):
        for kj in range(3):
            # tap (ki, kj): padded row 2*oh+ki -> phase (ki%2, kj%2), offset ki//2
            row0 = (2 * (ki % 2) + (kj % 2)) * HP2 + ki // 2
            col0 = kj // 2
            xs = x_ref[:, row0:row0 + OH, col0:col0 + OW, :]   # (BT, OH, OW, C_IN)
            xs2 = xs.reshape(BT * OH * OW, C_IN)               # minor dim unchanged
            w_tap = w_ref[ki, kj]                              # (C_IN, C_OUT)
            acc = acc + jnp.dot(xs2, w_tap,
                                preferred_element_type=jnp.float32,
                                precision=jax.lax.Precision.HIGHEST)
    y = acc * scale_ref[...] + bias_ref[...]                   # fused BatchNorm (eval)
    o_ref[...] = jnp.where(y > 0, y, slope * y).astype(o_ref.dtype)  # LeakyReLU


# ------------------------------- wrapper ----------------------------------- #

def downsample_forward(x, weight, gamma, beta, running_mean, running_var,
                       *, eps=1e-5, negative_slope=0.01, block_b=None):
    """x: (B, C, H, W) NCHW float32; weight: (C_out, C_in, 3, 3) OIHW."""
    B, C, H, W = x.shape
    C_out = weight.shape[0]
    assert weight.shape == (C_out, C, 3, 3)
    K, P, S = 3, 1, 2
    OH = (H + 2 * P - K) // S + 1
    OW = (W + 2 * P - K) // S + 1
    Hp, Wp = H + 2 * P, W + 2 * P
    # TODO(synk): odd H/W needs one extra padded row/col in the phase split.
    assert Hp % 2 == 0 and Wp % 2 == 0, "even spatial sizes expected"
    Hp2, Wp2 = Hp // 2, Wp // 2                     # == OH + 1, OW + 1

    # ---- layout glue (plain JAX, fuses into one rearrangement pass) --------
    # reflect pad + NHWC + space-to-depth: turns the stride-2 conv into
    # unit-stride slices + MXU matmuls inside the kernel.
    xp = jnp.pad(x, ((0, 0), (0, 0), (P, P), (P, P)), mode="reflect")
    xp = jnp.transpose(xp, (0, 2, 3, 1))            # (B, Hp, Wp, C)
    ph = xp.reshape(B, Hp2, 2, Wp2, 2, C)
    ph = jnp.transpose(ph, (0, 2, 4, 1, 3, 5)).reshape(B, 4 * Hp2, Wp2, C)
    ph = ph.astype(jnp.float32)

    w_hwio = jnp.transpose(weight, (2, 3, 1, 0)).astype(jnp.float32)

    # Fold eval-mode BatchNorm into per-channel scale/bias constants.
    # TODO(synk): training-mode BatchNorm (batch statistics) is not fused.
    scale = (gamma / jnp.sqrt(running_var + eps)).astype(jnp.float32).reshape(1, C_out)
    bias = (beta - running_mean * (gamma / jnp.sqrt(running_var + eps))
            ).astype(jnp.float32).reshape(1, C_out)

    # Batch tile: amortize per-grid-step overhead, but keep >=2 steps so the
    # "parallel" batch axis can shard across TensorCores (v7x).
    if block_b is None:
        budget = 2 * 1024 * 1024                    # bytes per double-buffered input block
        per_b = 4 * Hp2 * Wp2 * C * 4
        block_b = max(1, min(B, budget // max(per_b, 1)))
        if B >= 2:
            block_b = min(block_b, max(1, B // 2))
        while B % block_b:
            block_b -= 1
    grid = (B // block_b,)

    kernel = functools.partial(
        _downsample_kernel, BT=block_b, HP2=Hp2, OH=OH, OW=OW,
        C_IN=C, C_OUT=C_out, slope=float(negative_slope))

    out_rows = pl.pallas_call(
        kernel,
        out_shape=jax.ShapeDtypeStruct((B * OH * OW, C_out), x.dtype),
        grid=grid,
        in_specs=[
            pl.BlockSpec((block_b, 4 * Hp2, Wp2, C), lambda b: (b, 0, 0, 0)),
            pl.BlockSpec((3, 3, C, C_out), lambda b: (0, 0, 0, 0)),
            pl.BlockSpec((1, C_out), lambda b: (0, 0)),
            pl.BlockSpec((1, C_out), lambda b: (0, 0)),
        ],
        out_specs=pl.BlockSpec((block_b * OH * OW, C_out), lambda b: (b, 0)),
        compiler_params=pltpu.CompilerParams(dimension_semantics=("parallel",)),
    )(ph, w_hwio, scale, bias)

    # layout glue back to NCHW
    return out_rows.reshape(B, OH, OW, C_out).transpose(0, 3, 1, 2)


# --------------------- pure-JAX reference (torch semantics) ---------------- #

def _reference(x, weight, gamma, beta, running_mean, running_var,
               eps=1e-5, negative_slope=0.01):
    B, C, H, W = x.shape
    C_out = weight.shape[0]
    OH = (H + 2 - 3) // 2 + 1
    OW = (W + 2 - 3) // 2 + 1
    xp = jnp.pad(x, ((0, 0), (0, 0), (1, 1), (1, 1)), mode="reflect")
    y = jnp.zeros((B, C_out, OH, OW), jnp.float32)
    for ki in range(3):
        for kj in range(3):
            xs = xp[:, :, ki:ki + 2 * OH - 1:2, kj:kj + 2 * OW - 1:2]  # (B,Cin,OH,OW)
            w_tap = weight[:, :, ki, kj]                               # (Cout,Cin)
            y = y + jnp.sum(xs[:, None] * w_tap[None, :, :, None, None], axis=2)
    scale = gamma / jnp.sqrt(running_var + eps)
    bias = beta - running_mean * scale
    y = y * scale[None, :, None, None] + bias[None, :, None, None]
    return jnp.where(y > 0, y, negative_slope * y)


# ---------------------------------- main ----------------------------------- #

if __name__ == "__main__":
    key = jax.random.PRNGKey(0)
    kx, kw, kg, kb, km, kv = jax.random.split(key, 6)
    B, C, H, W = 2, 4, 16, 16
    x = jax.random.uniform(kx, (B, C, H, W), dtype=jnp.float32)
    weight = 0.1 * jax.random.normal(kw, (C, C, 3, 3), dtype=jnp.float32)
    gamma = 1.0 + 0.1 * jax.random.normal(kg, (C,), dtype=jnp.float32)
    beta = 0.1 * jax.random.normal(kb, (C,), dtype=jnp.float32)
    running_mean = 0.1 * jax.random.normal(km, (C,), dtype=jnp.float32)
    running_var = 1.0 + 0.1 * jax.random.uniform(kv, (C,), dtype=jnp.float32)

    fwd = jax.jit(downsample_forward)
    out = jax.block_until_ready(fwd(x, weight, gamma, beta,
                                    running_mean, running_var))

    ref = _reference(x, weight, gamma, beta, running_mean, running_var)
    # tolerance covers MXU f32 pass decomposition vs exact-f32 VPU reference
    np.testing.assert_allclose(np.asarray(out), np.asarray(ref),
                               rtol=2e-3, atol=2e-3)
    print("KERNEL_OK")
</pallas_src>

<mosaic_0001>
module attributes {stable_mosaic.version = 11 : i64} {
  func.func @_downsample_kernel(%arg0: i32, %arg1: memref<1x36x9x4xf32, #tpu.memory_space<vmem>>, %arg2: memref<3x3x4x4xf32, #tpu.memory_space<vmem>>, %arg3: memref<1x4xf32, #tpu.memory_space<vmem>>, %arg4: memref<1x4xf32, #tpu.memory_space<vmem>>, %arg5: memref<64x4xf32, #tpu.memory_space<vmem>>) attributes {dimension_semantics = [#tpu.dimension_semantics<parallel>], iteration_bounds = array<i64: 2>, scalar_prefetch = 0 : i64, scratch_operands = 0 : i64, tpu.core_type = #tpu.core_type<tc>, window_params = [{transform_indices = @transform_0, window_bounds = array<i64: 1, 36, 9, 4>}, {pipeline_mode = #tpu.pipeline_mode<synchronous>, transform_indices = @transform_1, window_bounds = array<i64: 3, 3, 4, 4>}, {pipeline_mode = #tpu.pipeline_mode<synchronous>, transform_indices = @transform_2, window_bounds = array<i64: 1, 4>}, {pipeline_mode = #tpu.pipeline_mode<synchronous>, transform_indices = @transform_3, window_bounds = array<i64: 1, 4>}, {transform_indices = @transform_4, window_bounds = array<i64: 64, 4>}]} {
    %cst = arith.constant 0.000000e+00 : f32
    %0 = vector.broadcast %cst : f32 to vector<64x4xf32>
    %c0 = arith.constant 0 : index
    %c0_0 = arith.constant 0 : index
    %c0_1 = arith.constant 0 : index
    %c0_2 = arith.constant 0 : index
    %1 = vector.load %arg1[%c0, %c0_0, %c0_1, %c0_2] : memref<1x36x9x4xf32, #tpu.memory_space<vmem>>, vector<1x8x8x4xf32>
    %2 = vector.shape_cast %1 : vector<1x8x8x4xf32> to vector<64x4xf32>
    %c0_3 = arith.constant 0 : index
    %c0_4 = arith.constant 0 : index
    %c0_5 = arith.constant 0 : index
    %c0_6 = arith.constant 0 : index
    %3 = vector.load %arg2[%c0_3, %c0_4, %c0_5, %c0_6] : memref<3x3x4x4xf32, #tpu.memory_space<vmem>>, vector<1x1x4x4xf32>
    %4 = vector.shape_cast %3 : vector<1x1x4x4xf32> to vector<4x4xf32>
    %cst_7 = arith.constant dense<0.000000e+00> : vector<64x4xf32>
    %5 = tpu.matmul %2, %4, %cst_7 {dimension_numbers = #tpu.dot_dimension_numbers<[1], [0], [0], [1], [0, 0, 1, 1], [], []>, precision = #tpu.contract_precision<fp32>} : vector<64x4xf32>, vector<4x4xf32>, vector<64x4xf32> -> vector<64x4xf32>
    %6 = arith.addf %0, %5 : vector<64x4xf32>
    %c0_8 = arith.constant 0 : index
    %c9 = arith.constant 9 : index
    %c0_9 = arith.constant 0 : index
    %c0_10 = arith.constant 0 : index
    %7 = vector.load %arg1[%c0_8, %c9, %c0_9, %c0_10] : memref<1x36x9x4xf32, #tpu.memory_space<vmem>>, vector<1x8x8x4xf32>
    %8 = vector.shape_cast %7 : vector<1x8x8x4xf32> to vector<64x4xf32>
    %c0_11 = arith.constant 0 : index
    %c1 = arith.constant 1 : index
    %c0_12 = arith.constant 0 : index
    %c0_13 = arith.constant 0 : index
    %9 = vector.load %arg2[%c0_11, %c1, %c0_12, %c0_13] : memref<3x3x4x4xf32, #tpu.memory_space<vmem>>, vector<1x1x4x4xf32>
    %10 = vector.shape_cast %9 : vector<1x1x4x4xf32> to vector<4x4xf32>
    %cst_14 = arith.constant dense<0.000000e+00> : vector<64x4xf32>
    %11 = tpu.matmul %8, %10, %cst_14 {dimension_numbers = #tpu.dot_dimension_numbers<[1], [0], [0], [1], [0, 0, 1, 1], [], []>, precision = #tpu.contract_precision<fp32>} : vector<64x4xf32>, vector<4x4xf32>, vector<64x4xf32> -> vector<64x4xf32>
    %12 = arith.addf %6, %11 : vector<64x4xf32>
    %c0_15 = arith.constant 0 : index
    %c0_16 = arith.constant 0 : index
    %c1_17 = arith.constant 1 : index
    %c0_18 = arith.constant 0 : index
    %13 = vector.load %arg1[%c0_15, %c0_16, %c1_17, %c0_18] : memref<1x36x9x4xf32, #tpu.memory_space<vmem>>, vector<1x8x8x4xf32>
    %14 = vector.shape_cast %13 : vector<1x8x8x4xf32> to vector<64x4xf32>
    %c0_19 = arith.constant 0 : index
    %c2 = arith.constant 2 : index
    %c0_20 = arith.constant 0 : index
    %c0_21 = arith.constant 0 : index
    %15 = vector.load %arg2[%c0_19, %c2, %c0_20, %c0_21] : memref<3x3x4x4xf32, #tpu.memory_space<vmem>>, vector<1x1x4x4xf32>
    %16 = vector.shape_cast %15 : vector<1x1x4x4xf32> to vector<4x4xf32>
    %cst_22 = arith.constant dense<0.000000e+00> : vector<64x4xf32>
    %17 = tpu.matmul %14, %16, %cst_22 {dimension_numbers = #tpu.dot_dimension_numbers<[1], [0], [0], [1], [0, 0, 1, 1], [], []>, precision = #tpu.contract_precision<fp32>} : vector<64x4xf32>, vector<4x4xf32>, vector<64x4xf32> -> vector<64x4xf32>
    %18 = arith.addf %12, %17 : vector<64x4xf32>
    %c0_23 = arith.constant 0 : index
    %c18 = arith.constant 18 : index
    %c0_24 = arith.constant 0 : index
    %c0_25 = arith.constant 0 : index
    %19 = vector.load %arg1[%c0_23, %c18, %c0_24, %c0_25] : memref<1x36x9x4xf32, #tpu.memory_space<vmem>>, vector<1x8x8x4xf32>
    %20 = vector.shape_cast %19 : vector<1x8x8x4xf32> to vector<64x4xf32>
    %c1_26 = arith.constant 1 : index
    %c0_27 = arith.constant 0 : index
    %c0_28 = arith.constant 0 : index
    %c0_29 = arith.constant 0 : index
    %21 = vector.load %arg2[%c1_26, %c0_27, %c0_28, %c0_29] : memref<3x3x4x4xf32, #tpu.memory_space<vmem>>, vector<1x1x4x4xf32>
    %22 = vector.shape_cast %21 : vector<1x1x4x4xf32> to vector<4x4xf32>
    %cst_30 = arith.constant dense<0.000000e+00> : vector<64x4xf32>
    %23 = tpu.matmul %20, %22, %cst_30 {dimension_numbers = #tpu.dot_dimension_numbers<[1], [0], [0], [1], [0, 0, 1, 1], [], []>, precision = #tpu.contract_precision<fp32>} : vector<64x4xf32>, vector<4x4xf32>, vector<64x4xf32> -> vector<64x4xf32>
    %24 = arith.addf %18, %23 : vector<64x4xf32>
    %c0_31 = arith.constant 0 : index
    %c27 = arith.constant 27 : index
    %c0_32 = arith.constant 0 : index
    %c0_33 = arith.constant 0 : index
    %25 = vector.load %arg1[%c0_31, %c27, %c0_32, %c0_33] : memref<1x36x9x4xf32, #tpu.memory_space<vmem>>, vector<1x8x8x4xf32>
    %26 = vector.shape_cast %25 : vector<1x8x8x4xf32> to vector<64x4xf32>
    %c1_34 = arith.constant 1 : index
    %c1_35 = arith.constant 1 : index
    %c0_36 = arith.constant 0 : index
    %c0_37 = arith.constant 0 : index
    %27 = vector.load %arg2[%c1_34, %c1_35, %c0_36, %c0_37] : memref<3x3x4x4xf32, #tpu.memory_space<vmem>>, vector<1x1x4x4xf32>
    %28 = vector.shape_cast %27 : vector<1x1x4x4xf32> to vector<4x4xf32>
    %cst_38 = arith.constant dense<0.000000e+00> : vector<64x4xf32>
    %29 = tpu.matmul %26, %28, %cst_38 {dimension_numbers = #tpu.dot_dimension_numbers<[1], [0], [0], [1], [0, 0, 1, 1], [], []>, precision = #tpu.contract_precision<fp32>} : vector<64x4xf32>, vector<4x4xf32>, vector<64x4xf32> -> vector<64x4xf32>
    %30 = arith.addf %24, %29 : vector<64x4xf32>
    %c0_39 = arith.constant 0 : index
    %c18_40 = arith.constant 18 : index
    %c1_41 = arith.constant 1 : index
    %c0_42 = arith.constant 0 : index
    %31 = vector.load %arg1[%c0_39, %c18_40, %c1_41, %c0_42] : memref<1x36x9x4xf32, #tpu.memory_space<vmem>>, vector<1x8x8x4xf32>
    %32 = vector.shape_cast %31 : vector<1x8x8x4xf32> to vector<64x4xf32>
    %c1_43 = arith.constant 1 : index
    %c2_44 = arith.constant 2 : index
    %c0_45 = arith.constant 0 : index
    %c0_46 = arith.constant 0 : index
    %33 = vector.load %arg2[%c1_43, %c2_44, %c0_45, %c0_46] : memref<3x3x4x4xf32, #tpu.memory_space<vmem>>, vector<1x1x4x4xf32>
    %34 = vector.shape_cast %33 : vector<1x1x4x4xf32> to vector<4x4xf32>
    %cst_47 = arith.constant dense<0.000000e+00> : vector<64x4xf32>
    %35 = tpu.matmul %32, %34, %cst_47 {dimension_numbers = #tpu.dot_dimension_numbers<[1], [0], [0], [1], [0, 0, 1, 1], [], []>, precision = #tpu.contract_precision<fp32>} : vector<64x4xf32>, vector<4x4xf32>, vector<64x4xf32> -> vector<64x4xf32>
    %36 = arith.addf %30, %35 : vector<64x4xf32>
    %c0_48 = arith.constant 0 : index
    %c1_49 = arith.constant 1 : index
    %c0_50 = arith.constant 0 : index
    %c0_51 = arith.constant 0 : index
    %37 = vector.load %arg1[%c0_48, %c1_49, %c0_50, %c0_51] : memref<1x36x9x4xf32, #tpu.memory_space<vmem>>, vector<1x8x8x4xf32>
    %38 = vector.shape_cast %37 : vector<1x8x8x4xf32> to vector<64x4xf32>
    %c2_52 = arith.constant 2 : index
    %c0_53 = arith.constant 0 : index
    %c0_54 = arith.constant 0 : index
    %c0_55 = arith.constant 0 : index
    %39 = vector.load %arg2[%c2_52, %c0_53, %c0_54, %c0_55] : memref<3x3x4x4xf32, #tpu.memory_space<vmem>>, vector<1x1x4x4xf32>
    %40 = vector.shape_cast %39 : vector<1x1x4x4xf32> to vector<4x4xf32>
    %cst_56 = arith.constant dense<0.000000e+00> : vector<64x4xf32>
    %41 = tpu.matmul %38, %40, %cst_56 {dimension_numbers = #tpu.dot_dimension_numbers<[1], [0], [0], [1], [0, 0, 1, 1], [], []>, precision = #tpu.contract_precision<fp32>} : vector<64x4xf32>, vector<4x4xf32>, vector<64x4xf32> -> vector<64x4xf32>
    %42 = arith.addf %36, %41 : vector<64x4xf32>
    %c0_57 = arith.constant 0 : index
    %c10 = arith.constant 10 : index
    %c0_58 = arith.constant 0 : index
    %c0_59 = arith.constant 0 : index
    %43 = vector.load %arg1[%c0_57, %c10, %c0_58, %c0_59] : memref<1x36x9x4xf32, #tpu.memory_space<vmem>>, vector<1x8x8x4xf32>
    %44 = vector.shape_cast %43 : vector<1x8x8x4xf32> to vector<64x4xf32>
    %c2_60 = arith.constant 2 : index
    %c1_61 = arith.constant 1 : index
    %c0_62 = arith.constant 0 : index
    %c0_63 = arith.constant 0 : index
    %45 = vector.load %arg2[%c2_60, %c1_61, %c0_62, %c0_63] : memref<3x3x4x4xf32, #tpu.memory_space<vmem>>, vector<1x1x4x4xf32>
    %46 = vector.shape_cast %45 : vector<1x1x4x4xf32> to vector<4x4xf32>
    %cst_64 = arith.constant dense<0.000000e+00> : vector<64x4xf32>
    %47 = tpu.matmul %44, %46, %cst_64 {dimension_numbers = #tpu.dot_dimension_numbers<[1], [0], [0], [1], [0, 0, 1, 1], [], []>, precision = #tpu.contract_precision<fp32>} : vector<64x4xf32>, vector<4x4xf32>, vector<64x4xf32> -> vector<64x4xf32>
    %48 = arith.addf %42, %47 : vector<64x4xf32>
    %c0_65 = arith.constant 0 : index
    %c1_66 = arith.constant 1 : index
    %c1_67 = arith.constant 1 : index
    %c0_68 = arith.constant 0 : index
    %49 = vector.load %arg1[%c0_65, %c1_66, %c1_67, %c0_68] : memref<1x36x9x4xf32, #tpu.memory_space<vmem>>, vector<1x8x8x4xf32>
    %50 = vector.shape_cast %49 : vector<1x8x8x4xf32> to vector<64x4xf32>
    %c2_69 = arith.constant 2 : index
    %c2_70 = arith.constant 2 : index
    %c0_71 = arith.constant 0 : index
    %c0_72 = arith.constant 0 : index
    %51 = vector.load %arg2[%c2_69, %c2_70, %c0_71, %c0_72] : memref<3x3x4x4xf32, #tpu.memory_space<vmem>>, vector<1x1x4x4xf32>
    %52 = vector.shape_cast %51 : vector<1x1x4x4xf32> to vector<4x4xf32>
    %cst_73 = arith.constant dense<0.000000e+00> : vector<64x4xf32>
    %53 = tpu.matmul %50, %52, %cst_73 {dimension_numbers = #tpu.dot_dimension_numbers<[1], [0], [0], [1], [0, 0, 1, 1], [], []>, precision = #tpu.contract_precision<fp32>} : vector<64x4xf32>, vector<4x4xf32>, vector<64x4xf32> -> vector<64x4xf32>
    %54 = arith.addf %48, %53 : vector<64x4xf32>
    %c0_74 = arith.constant 0 : index
    %c0_75 = arith.constant 0 : index
    %55 = vector.load %arg3[%c0_74, %c0_75] : memref<1x4xf32, #tpu.memory_space<vmem>>, vector<1x4xf32>
    %56 = vector.broadcast %55 : vector<1x4xf32> to vector<64x4xf32>
    %57 = arith.mulf %54, %56 : vector<64x4xf32>
    %c0_76 = arith.constant 0 : index
    %c0_77 = arith.constant 0 : index
    %58 = vector.load %arg4[%c0_76, %c0_77] : memref<1x4xf32, #tpu.memory_space<vmem>>, vector<1x4xf32>
    %59 = vector.broadcast %58 : vector<1x4xf32> to vector<64x4xf32>
    %60 = arith.addf %57, %59 : vector<64x4xf32>
    %cst_78 = arith.constant 0.000000e+00 : f32
    %61 = vector.broadcast %cst_78 : f32 to vector<64x4xf32>
    %62 = arith.cmpf ogt, %60, %61 : vector<64x4xf32>
    %cst_79 = arith.constant 0.00999999977 : f32
    %63 = vector.broadcast %cst_79 : f32 to vector<64x4xf32>
    %64 = arith.mulf %63, %60 : vector<64x4xf32>
    %65 = arith.select %62, %60, %64 : vector<64x4xi1>, vector<64x4xf32>
    %c0_80 = arith.constant 0 : index
    %c0_81 = arith.constant 0 : index
    %66 = vector.load %arg5[%c0_80, %c0_81] : memref<64x4xf32, #tpu.memory_space<vmem>>, vector<64x4xf32>
    tpu.vector_store %arg5[%c0_80, %c0_81], %65 {strides = array<i32>} : memref<64x4xf32, #tpu.memory_space<vmem>>, vector<64x4xf32>,
    return
  }
  func.func @transform_0(%arg0: i32) -> (i32, i32, i32, i32) {
    %c0_i32 = arith.constant 0 : i32
    %c0_i32_0 = arith.constant 0 : i32
    %c0_i32_1 = arith.constant 0 : i32
    %c0_i32_2 = arith.constant 0 : i32
    return %arg0, %c0_i32, %c0_i32_0, %c0_i32_1 : i32, i32, i32, i32
  }
  func.func @transform_1(%arg0: i32) -> (i32, i32, i32, i32) {
    %c0_i32 = arith.constant 0 : i32
    %c0_i32_0 = arith.constant 0 : i32
    %c0_i32_1 = arith.constant 0 : i32
    %c0_i32_2 = arith.constant 0 : i32
    %c0_i32_3 = arith.constant 0 : i32
    return %c0_i32, %c0_i32_0, %c0_i32_1, %c0_i32_2 : i32, i32, i32, i32
  }
  func.func @transform_2(%arg0: i32) -> (i32, i32) {
    %c0_i32 = arith.constant 0 : i32
    %c0_i32_0 = arith.constant 0 : i32
    %c0_i32_1 = arith.constant 0 : i32
    return %c0_i32, %c0_i32_0 : i32, i32
  }
  func.func @transform_3(%arg0: i32) -> (i32, i32) {
    %c0_i32 = arith.constant 0 : i32
    %c0_i32_0 = arith.constant 0 : i32
    %c0_i32_1 = arith.constant 0 : i32
    return %c0_i32, %c0_i32_0 : i32, i32
  }
  func.func @transform_4(%arg0: i32) -> (i32, i32) {
    %c0_i32 = arith.constant 0 : i32
    %c0_i32_0 = arith.constant 0 : i32
    return %arg0, %c0_i32 : i32, i32
  }
}

</mosaic_0001>

<bundles_post_ra>
// kernel: downsample_forward.1
= control target key start
LH: loop header
LB: loop body
LE: loop exit
PB: predicated region body
PF: predicated region fallthrough
CT: control target
= control target key end

     0   :  { %s9219_s15 = smov 0   ;;  %s10595_s0 = inlined_call_operand.vmem [shape: f32[2,36,9,4], index: 0, kind: input, shape index: {}]   ;;  %s10596_s1 = inlined_call_operand.vmem [shape: f32[3,3,4,4], index: 1, kind: input, shape index: {}]   ;;  %s10597_s2 = inlined_call_operand.vmem [shape: f32[1,4], index: 2, kind: input, shape index: {}]   ;;  %s10598_s3 = inlined_call_operand.vmem [shape: f32[1,4], index: 3, kind: input, shape index: {}]   ;;  %s10599_s4 = inlined_call_operand.vmem [shape: f32[128,4], index: 4, kind: output, shape index: {}]  }
   0x1 LB: > { %s9225_s16 = sadd.s32 4294967295, %s9192_s15   ;;  %p7439_p0 = scmp.ge.s32.totalorder %s9192_s15, 1  ;;  %s9192_s15 = sphi %s9219_s15, %s14_s15  }
   0x2   : > { %p162_p1 = scmp.lt.s32.totalorder %s9192_s15, 3 }
   0x4   : > { %p163_p2 = pnand %p7439_p0, %p162_p1 }
   0x6   : > { %166 = sbr.rel (%p163_p2) target bundleno = 687 (0x2af), region = 36 }
   0xd   : > { %vm244_vm0 = vcmask 1043456   ;;  %v7470_v0 = vld [vmem:[%s10596_s1 + $0x10] sm:$0xf]  ;;  %p188_p3 = scmp.lt.s32.totalorder %s9225_s16, 1  ;;  %v7451_v2 = vld [vmem:[%s10596_s1 + $0x4] sm:$0xf] }
   0xe   : > { %v3390_v1 = vsel %vm244_vm0, %v7470_v0, 0  ;;  %v246_v4 = vsel %vm244_vm0, %v7451_v2, 0  ;;  %vm219_vm1 = vcmask 31744   ;;  %s7441_s14 = sshll.u32 %s9225_s16, 3 }
   0xf   : > { %v9237_v3 = vand.u32 4294901760, %v3390_v1  ;;  %s189_s21 = scalar_select %p188_p3, %s9225_s16, 1  ;;  %v9241_v5 = vand.u32 4294901760, %v246_v4 }
  0x10   : > { %p194_p4 = scmp.lt.s32.totalorder %s7441_s14, 15 }
  0x11   : > { %8375 = vmatprep.subr.mxu0 %v9237_v3  ;;  %s9177_s22 = smul.u32 576, %s189_s21  ;;  %v9245_v6 = vsub.f32 %v3390_v1, %v9237_v3  ;;  %7997 = vmatprep.subr.mxu1 %v9241_v5  ;;  %v9250_v7 = vsub.f32 %v246_v4, %v9241_v5 }
  0x12   : > { %8376 = vmatpush3.msra.mxu0 %v9237_v3  ;;  %7998 = vmatpush3.msra.mxu1 %v9241_v5  ;;  %s10778_s14 = smov (!%p194_p4, %s7441_s14), 15 }
  0x13   : > { %10673 = vst [vmem:[#allocation2_spill] sm:$0xff] %v9245_v6  ;;  %s9255_s25 = scalar_lea.vmem %s10595_s0, %s9177_s22  ;;  %v9259_v8 = vand.u32 4294901760, %v9245_v6  ;;  %v9265_v12 = vand.u32 4294901760, %v9250_v7  ;;  %s7442_s16 = sshll.u32 %s10778_s14, 3 }
  0x14   : > { %v7462_v9 = vld [vmem:[%s9255_s25 + $0x1b0] sm:$0xff]  ;;  %v7463_v10 = vld [vmem:[%s9255_s25 + $0x1c0] sm:$0xff]  ;;  %s10574_s23 = scalar_lea.vmem %s10599_s4, %s7442_s16 }
  0x15   : > { %10674 = vst [vmem:[#allocation3_spill] sm:$0xff] %v9259_v8  ;;  %v7443_v11 = vld [vmem:[%s9255_s25 + $0x90] sm:$0xff]  ;;  %v3366_v13 = vsel %vm219_vm1, %v7462_v9, 0  ;;  %v3369_v14 = vsel %vm219_vm1, %v7463_v10, 0  ;;  %8389 = vmatprep.subr.mxu0 %v9259_v8  ;;  %v7444_v17 = vld [vmem:[%s9255_s25 + $0xa0] sm:$0xff]  ;;  %v398_v22 = vsub.f32 %v9250_v7, %v9265_v12 }
  0x16   : > { %v221_v15 = vsel %vm219_vm1, %v7443_v11, 0  ;;  %v7464_v16 = vld [vmem:[%s9255_s25 + $0x1d0] sm:$0xff]  ;;  %v7465_v18 = vld [vmem:[%s9255_s25 + $0x1e0] sm:$0xff]  ;;  %v9274_v19 = vand.u32 4294901760, %v3366_v13  ;;  %v9276_v20 = vand.u32 4294901760, %v3369_v14  ;;  %v224_v25 = vsel %vm219_vm1, %v7444_v17, 0 }
  0x17   : > { %v9278_v21 = vand.u32 4294901760, %v221_v15  ;;  %v7445_v23 = vld [vmem:[%s9255_s25 + $0xb0] sm:$0xff]  ;;  %v3372_v24 = vsel %vm219_vm1, %v7464_v16, 0  ;;  %v3375_v26 = vsel %vm219_vm1, %v7465_v18, 0  ;;  %v399_v32 = vand.u32 4294901760, %v398_v22  ;;  %v7446_v45 = vld [vmem:[%s9255_s25 + $0xc0] sm:$0xff] }
  0x18   : > { %10675 = vst [vmem:[#allocation4_spill] sm:$0xff] %v9274_v19  ;;  %10676 = vst [vmem:[#allocation5_spill] sm:$0xff] %v9276_v20  ;;  %v227_v27 = vsel %vm219_vm1, %v7445_v23, 0  ;;  %v7466_v28 = vld [vmem:[%s9255_s25 + $0x1f0] sm:$0xff]  ;;  %v9289_v29 = vsub.f32 %v3366_v13, %v9274_v19  ;;  %v9292_v30 = vsub.f32 %v3369_v14, %v9276_v20  ;;  %v9297_v33 = vand.u32 4294901760, %v3372_v24  ;;  %v7467_v48 = vld [vmem:[%s9255_s25 + $0x200] sm:$0xff] }
  0x19   : > { %v9295_v31 = vsub.f32 %v221_v15, %v9278_v21  ;;  %v9299_v34 = vand.u32 4294901760, %v224_v25  ;;  %v9301_v35 = vand.u32 4294901760, %v3375_v26  ;;  %v9303_v36 = vand.u32 4294901760, %v227_v27  ;;  %8011 = vmatprep.subr.mxu1 %v399_v32  ;;  %v7447_v53 = vld [vmem:[%s9255_s25 + $0xd0] sm:$0xff]  ;;  %v7448_v62 = vld [vmem:[%s9255_s25 + $0xe0] sm:$0xff] }
  0x1a   : > { %10677 = vst [vmem:[#allocation6_spill] sm:$0xff] %v9289_v29  ;;  %10678 = vst [vmem:[#allocation7_spill] sm:$0xff] %v9292_v30  ;;  %v10607_v37 = vand.u32 4294901760, %v9289_v29  ;;  %v10606_v38 = vand.u32 4294901760, %v9292_v30  ;;  %v3378_v40 = vsel %vm219_vm1, %v7466_v28, 0  ;;  %v9310_v41 = vsub.f32 %v3372_v24, %v9297_v33  ;;  %v7468_v54 = vld [vmem:[%s9255_s25 + $0x210] sm:$0xff] }
  0x1b   : > { %10679 = vst [vmem:[#allocation8_spill] sm:$0xff] %v9297_v33  ;;  %10680 = vst [vmem:[#allocation9_spill] sm:$0xff] %v9301_v35  ;;  %v10616_v39 = vand.u32 4294901760, %v9295_v31  ;;  %v9313_v42 = vsub.f32 %v224_v25, %v9299_v34  ;;  %v9316_v43 = vsub.f32 %v3375_v26, %v9301_v35  ;;  %v9319_v44 = vsub.f32 %v227_v27, %v9303_v36  ;;  %v7469_v63 = vld [vmem:[%s9255_s25 + $0x220] sm:$0xff]  ;;  %v7449_v14 = vld [vmem:[%s9255_s25 + $0xf0] sm:$0xff] }
  0x1c   : > { %10681 = vst [vmem:[#allocation10_spill] sm:$0xff] %v9310_v41  ;;  %8377 = vmatprep.mubr.f32.mxu0 %v10607_v37  ;;  %v9327_v47 = vand.u32 4294901760, %v3378_v40  ;;  %v10605_v49 = vand.u32 4294901760, %v9310_v41  ;;  %v230_v57 = vsel %vm219_vm1, %v7446_v45, 0  ;;  %v3381_v61 = vsel %vm219_vm1, %v7467_v48, 0  ;;  %v7450_v15 = vld [vmem:[%s9255_s25 + $0x100] sm:$0xff] }
  0x1d   : > { %10682 = vst [vmem:[#allocation11_spill] sm:$0xff] %v9316_v43  ;;  %v317_v46 = vsub.f32 %v9295_v31, %v10616_v39  ;;  %8378 = vmatmul.mubr.f32.vlgmr.msra.gmra.mrb[0].mxu0 %v10606_v38  ;;  %v10614_v50 = vand.u32 4294901760, %v9313_v42  ;;  %v10604_v51 = vand.u32 4294901760, %v9316_v43  ;;  %v10613_v52 = vand.u32 4294901760, %v9319_v44  ;;  %v7477_v38 = vld [vmem:[%s9255_s25 + $0x181] sm:$0xff] }
  0x1e   : > { %10683 = vst [vmem:[#allocation12_spill] sm:$0xff] %v9327_v47  ;;  %8390 = vmatpush3.msra.mxu0 %v9259_v8  ;;  %v9340_v56 = vsub.f32 %v3378_v40, %v9327_v47  ;;  %8380 = vmatprep.mubr.f32.mxu0 %v10605_v49  ;;  %v9351_v60 = vand.u32 4294901760, %v230_v57  ;;  %v9358_v1 = vand.u32 4294901760, %v3381_v61  ;;  %v233_v2 = vsel %vm219_vm1, %v7447_v53, 0  ;;  %v7476_v49 = vld [vmem:[%s9255_s25 + $0x171] sm:$0xff]  ;;  %v7495_v43 = vld [vmem:[%s9255_s25 + $0x100] sm:$0xff] }
  0x1f   : > { %v318_v55 = vand.u32 4294901760, %v317_v46  ;;  %v327_v58 = vsub.f32 %v9313_v42, %v10614_v50  ;;  %v337_v59 = vsub.f32 %v9319_v44, %v10613_v52  ;;  %8403 = vmatprep.subr.mxu0 %v9237_v3  ;;  %v3384_v4 = vsel %vm219_vm1, %v7468_v54, 0 }
  0x20   : > { %10684 = vst [vmem:[#allocation13_spill] sm:$0xff] %v9340_v56  ;;  %v10603_v0 = vand.u32 4294901760, %v9340_v56  ;;  %10685 = vst [vmem:[#allocation14_spill] sm:$0xff] %v9358_v1  ;;  %v9365_v11 = vsub.f32 %v230_v57, %v9351_v60  ;;  %v9367_v13 = vand.u32 4294901760, %v233_v2  ;;  %v9374_v16 = vsub.f32 %v3381_v61, %v9358_v1  ;;  %v7494_v56 = vld [vmem:[%s9255_s25 + $0xf0] sm:$0xff] }
  0x21   : > { %7999 = vmatprep.mubr.f32.mxu1 %v318_v55  ;;  %v328_v9 = vand.u32 4294901760, %v327_v58  ;;  %8381 = vmatmul.mubr.f32.gmra.mrb[2].mxu0 %v10604_v51  ;;  %v338_v10 = vand.u32 4294901760, %v337_v59  ;;  %v9376_v17 = vand.u32 4294901760, %v3384_v4  ;;  %v236_v18 = vsel %vm219_vm1, %v7448_v62, 0  ;;  %v7479_v58 = vld [vmem:[%s10596_s1 + $0x14] sm:$0xf] }
  0x22   : > { %8383 = vmatprep.mubr.f32.mxu0 %v10603_v0  ;;  %10686 = vst [vmem:[#allocation15_spill] sm:$0xff] %v9374_v16  ;;  %v3387_v22 = vsel %vm219_vm1, %v7469_v63, 0  ;;  %v10612_v23 = vand.u32 4294901760, %v9365_v11  ;;  %v9382_v24 = vsub.f32 %v233_v2, %v9367_v13  ;;  %v9384_v25 = vand.u32 4294901760, %v236_v18 }
  0x23   : > { %10687 = vst [vmem:[#allocation16_spill] sm:$0xff] %v9376_v17  ;;  %8000 = vmatmul.mubr.f32.vlgmr.msra.gmra.mrb[0].mxu1 %v328_v9  ;;  %v9386_v26 = vand.u32 4294901760, %v3387_v22  ;;  %v10602_v27 = vand.u32 4294901760, %v9374_v16  ;;  %v9390_v28 = vsub.f32 %v3384_v4, %v9376_v17  ;;  %v239_v40 = vsel %vm219_vm1, %v7449_v14, 0 }
  0x24   : > { %8012 = vmatpush3.msra.mxu1 %v399_v32  ;;  %8002 = vmatprep.mubr.f32.mxu1 %v338_v10  ;;  %v242_v45 = vsel %vm219_vm1, %v7450_v15, 0  ;;  %v347_v46 = vsub.f32 %v9365_v11, %v10612_v23  ;;  %v10611_v48 = vand.u32 4294901760, %v9382_v24  ;;  %v9399_v53 = vsub.f32 %v236_v18, %v9384_v25 }
  0x25   : > { %10688 = vst [vmem:[#allocation17_spill] sm:$0xff] %v9386_v26  ;;  %10689 = vst [vmem:[#allocation18_spill] sm:$0xff] %v9390_v28  ;;  %v9402_v32 = vsub.f32 %v3387_v22, %v9386_v26  ;;  %8025 = vmatprep.subr.mxu1 %v9250_v7  ;;  %8384 = vmatmul.mubr.f32.gmra.mrb[4].mxu0 %v10602_v27  ;;  %v10601_v54 = vand.u32 4294901760, %v9390_v28  ;;  %v9408_v55 = vand.u32 4294901760, %v239_v40  ;;  %v9410_v57 = vand.u32 4294901760, %v242_v45 }
  0x26   : > { %v348_v59 = vand.u32 4294901760, %v347_v46  ;;  %v357_v61 = vsub.f32 %v9382_v24, %v10611_v48  ;;  %v10610_v62 = vand.u32 4294901760, %v9399_v53  ;;  %v4182_v14 = vsel %vm244_vm0, %v7479_v58, 0 }
  0x27   : > { %10690 = vst [vmem:[#allocation19_spill] sm:$0xff] %v9402_v32  ;;  %v10600_v63 = vand.u32 4294901760, %v9402_v32  ;;  %8386 = vmatprep.mubr.f32.mxu0 %v10601_v54  ;;  %v9423_v2 = vsub.f32 %v239_v40, %v9408_v55  ;;  %v9426_v4 = vsub.f32 %v242_v45, %v9410_v57  ;;  %v9443_v46 = vand.u32 4294901760, %v4182_v14 }
  0x28   : > { %8003 = vmatmul.mubr.f32.gmra.mrb[2].mxu1 %v348_v59  ;;  %v358_v9 = vand.u32 4294901760, %v357_v61  ;;  %v367_v10 = vsub.f32 %v9399_v53, %v10610_v62  ;;  %v7471_v61 = vld [vmem:[%s9255_s25 + $0x121] sm:$0xff] }
  0x29   : > { %8387 = vmatmul.mubr.f32.gmra.mrb[6].mxu0 %v10600_v63  ;;  %v10609_v15 = vand.u32 4294901760, %v9423_v2  ;;  %v10608_v18 = vand.u32 4294901760, %v9426_v4  ;;  %v7475_v63 = vld [vmem:[%s9255_s25 + $0x161] sm:$0xff] }
  0x2a   : > { %8005 = vmatprep.mubr.f32.mxu1 %v358_v9  ;;  %v368_v22 = vand.u32 4294901760, %v367_v10  ;;  %8391 = vmatprep.mubr.f32.mxu0 %v9274_v19  ;;  %v9451_v9 = vsub.f32 %v4182_v14, %v9443_v46  ;;  %v4158_v10 = vsel %vm219_vm1, %v7471_v61, 0  ;;  %v7473_v14 = vld [vmem:[%s9255_s25 + $0x141] sm:$0xff]  ;;  %v7474_v61 = vld [vmem:[%s9255_s25 + $0x151] sm:$0xff]  ;;  %v4170_v51 = vsel %vm219_vm1, %v7475_v63, 0 }
  0x2b   : > { %v377_v40 = vsub.f32 %v9423_v2, %v10609_v15  ;;  %v387_v45 = vsub.f32 %v9426_v4, %v10608_v18  ;;  %v4176_v15 = vsel %vm219_vm1, %v7477_v38, 0 }
  0x2c   : > { %8006 = vmatmul.mubr.f32.gmra.mrb[4].mxu1 %v368_v22  ;;  %v7472_v22 = vld [vmem:[%s9255_s25 + $0x131] sm:$0xff]  ;;  %v9527_v52 = vand.u32 4294901760, %v4176_v15 }
  0x2d   : > { %v378_v58 = vand.u32 4294901760, %v377_v40  ;;  %v388_v59 = vand.u32 4294901760, %v387_v45  ;;  %8392 = vmatmul.mubr.f32.vlgmr.msra.gmra.mrb[0].mxu0 %v9276_v20  ;;  %v9460_v40 = vand.u32 4294901760, %v9451_v9  ;;  %v9467_v45 = vand.u32 4294901760, %v4158_v10 }
  0x2e   : > { %8394 = vmatprep.mubr.f32.mxu0 %v9297_v33  ;;  %8404 = vmatpush3.msra.mxu0 %v9237_v3 }
  0x2f   : > { %8008 = vmatprep.mubr.f32.mxu1 %v378_v58  ;;  %8417 = vmatprep.subr.mxu0 %v9443_v46  ;;  %v4161_v58 = vsel %vm219_vm1, %v7472_v22, 0  ;;  %v9480_v54 = vsub.f32 %v4158_v10, %v9467_v45 }
  0x30   : > { %8009 = vmatmul.mubr.f32.gmra.mrb[6].mxu1 %v388_v59  ;;  %v4164_v59 = vsel %vm219_vm1, %v7473_v14, 0  ;;  %v9482_v27 = vand.u32 4294901760, %v4161_v58  ;;  %v4167_v14 = vsel %vm219_vm1, %v7474_v61, 0  ;;  %v4173_v61 = vsel %vm219_vm1, %v7476_v49, 0 }
  0x31   : > { %8013 = vmatprep.mubr.f32.mxu1 %v9278_v21  ;;  %8395 = vmatmul.mubr.f32.gmra.mrb[2].mxu0 %v9301_v35  ;;  %v9485_v22 = vand.u32 4294901760, %v4164_v59  ;;  %v10615_v10 = vand.u32 4294901760, %v9480_v54  ;;  %v9498_v18 = vand.u32 4294901760, %v4167_v14  ;;  %v9520_v49 = vand.u32 4294901760, %v4173_v61 }
  0x32   : > { %8397 = vmatprep.mubr.f32.mxu0 %v9327_v47  ;;  %v9496_v37 = vsub.f32 %v4161_v58, %v9482_v27  ;;  %v7478_v58 = vld [vmem:[%s9255_s25 + $0x191] sm:$0xff] }
  0x33   : > { %v9503_v63 = vsub.f32 %v4164_v59, %v9485_v22  ;;  %v4253_v62 = vsub.f32 %v9480_v54, %v10615_v10  ;;  %v9518_v48 = vsub.f32 %v4167_v14, %v9498_v18  ;;  %v4179_v50 = vsel %vm219_vm1, %v7478_v58, 0 }
  0x34   : > { %8014 = vmatmul.mubr.f32.vlgmr.msra.gmra.mrb[0].mxu1 %v9299_v34  ;;  %v10619_v59 = vand.u32 4294901760, %v9496_v37  ;;  %v9540_v10 = vsub.f32 %v4173_v61, %v9520_v49  ;;  %v9542_v58 = vand.u32 4294901760, %v4179_v50 }
  0x35   : > { %8026 = vmatpush3.msra.mxu1 %v9250_v7  ;;  %8016 = vmatprep.mubr.f32.mxu1 %v9303_v36  ;;  %v4334_v7 = vsub.f32 %v9451_v9, %v9460_v40  ;;  %v10621_v38 = vand.u32 4294901760, %v9503_v63  ;;  %v4254_v39 = vand.u32 4294901760, %v4253_v62 }
  0x36   : > { %8398 = vmatmul.mubr.f32.gmra.mrb[4].mxu0 %v9358_v1  ;;  %8039 = vmatprep.subr.mxu1 %v9241_v5  ;;  %v4263_v14 = vsub.f32 %v9496_v37, %v10619_v59  ;;  %v9550_v59 = vsub.f32 %v4176_v15, %v9527_v52 }
  0x37   : > { %8400 = vmatprep.mubr.f32.mxu0 %v9376_v17  ;;  %v4335_v0 = vand.u32 4294901760, %v4334_v7  ;;  %v9505_v7 = vand.u32 4294901760, %v4170_v51 }
  0x38   : > { %8017 = vmatmul.mubr.f32.gmra.mrb[2].mxu1 %v9351_v60  ;;  %v4264_v61 = vand.u32 4294901760, %v4263_v14 }
  0x39   : > { %8019 = vmatprep.mubr.f32.mxu1 %v9367_v13  ;;  %v9525_v23 = vsub.f32 %v4170_v51, %v9505_v7  ;;  %v10624_v51 = vand.u32 4294901760, %v9518_v48 }
  0x3a   : > { %8401 = vmatmul.mubr.f32.gmra.mrb[6].mxu0 %v9386_v26 }
  0x3b   : > { %8405 = vmatprep.mubr.f32.mxu0 %v9274_v19  ;;  %v4283_v62 = vsub.f32 %v9518_v48, %v10624_v51  ;;  %v10691_v15 = vand.u32 4294901760, %v9525_v23 }
  0x3c   : > { %8020 = vmatmul.mubr.f32.gmra.mrb[4].mxu1 %v9384_v25 }
  0x3d   : > { %8022 = vmatprep.mubr.f32.mxu1 %v9408_v55  ;;  %v4284_v14 = vand.u32 4294901760, %v4283_v62 }
  0x3e   : > { %8406 = vmatmul.mubr.f32.vlgmr.msra.gmra.mrb[0].mxu0 %v9276_v20  ;;  %v7493_v20 = vld [vmem:[%s9255_s25 + $0xe0] sm:$0xff] }
  0x3f   : > { %8408 = vmatprep.mubr.f32.mxu0 %v9297_v33  ;;  %8418 = vmatpush3.msra.mxu0 %v9443_v46  ;;  %v10625_v33 = vand.u32 4294901760, %v9550_v59  ;;  %v5756_v16 = vsel %vm219_vm1, %v7493_v20, 0 }
  0x40   : > { %8023 = vmatmul.mubr.f32.gmra.mrb[6].mxu1 %v9410_v57  ;;  %8431 = vmatprep.subr.mxu0 %v4335_v0 }
  0x41   : > { %8027 = vmatprep.mubr.f32.mxu1 %v9295_v31 }
  0x42   : > { %8409 = vmatmul.mubr.f32.gmra.mrb[2].mxu0 %v9301_v35  ;;  %v4293_v35 = vsub.f32 %v9525_v23, %v10691_v15 }
  0x43   : > { %8411 = vmatprep.mubr.f32.mxu0 %v9327_v47 }
  0x44   : > { %8028 = vmatmul.mubr.f32.vlgmr.msra.gmra.mrb[0].mxu1 %v9313_v42 }
  0x45   : > { %8040 = vmatpush3.msra.mxu1 %v9241_v5  ;;  %8030 = vmatprep.mubr.f32.mxu1 %v9319_v44 }
  0x46   : > { %8412 = vmatmul.mubr.f32.gmra.mrb[4].mxu0 %v9358_v1  ;;  %8053 = vmatprep.subr.mxu1 %v9265_v12  ;;  %v4273_v1 = vsub.f32 %v9503_v63, %v10621_v38  ;;  %v9560_v38 = vsub.f32 %v4179_v50, %v9542_v58 }
  0x47   : > { %8414 = vmatprep.mubr.f32.mxu0 %v9376_v17  ;;  %v10628_v17 = vand.u32 4294901760, %v9540_v10 }
  0x48   : > { %8031 = vmatmul.mubr.f32.gmra.mrb[2].mxu1 %v9365_v11  ;;  %v4274_v47 = vand.u32 4294901760, %v4273_v1  ;;  %v10627_v50 = vand.u32 4294901760, %v9560_v38  ;;  %v4313_v1 = vsub.f32 %v9550_v59, %v10625_v33 }
  0x49   : > { %8033 = vmatprep.mubr.f32.mxu1 %v9382_v24  ;;  %v4303_v51 = vsub.f32 %v9540_v10, %v10628_v17  ;;  %v10701_v17 = vand.u32 4294901760, %v9496_v37 }
  0x4a   : > { %8415 = vmatmul.mubr.f32.gmra.mrb[6].mxu0 %v9386_v26  ;;  %v4323_v15 = vsub.f32 %v9560_v38, %v10627_v50 }
  0x4b   : > { %8419 = vmatprep.mubr.f32.mxu0 %v4254_v39  ;;  %v4294_v39 = vand.u32 4294901760, %v4293_v35  ;;  %v4304_v62 = vand.u32 4294901760, %v4303_v51  ;;  %v10693_v35 = vand.u32 4294901760, %v9313_v42  ;;  %v10696_v51 = vand.u32 4294901760, %v9382_v24 }
  0x4c   : > { %8034 = vmatmul.mubr.f32.gmra.mrb[4].mxu1 %v9399_v53  ;;  %v4324_v33 = vand.u32 4294901760, %v4323_v15  ;;  %v10697_v42 = vand.u32 4294901760, %v9399_v53  ;;  %v199_v53 = vld [vmem:[%s9255_s25] sm:$0xff]  ;;  %v202_v15 = vld [vmem:[%s9255_s25 + $0x30] sm:$0xff] }
  0x4d   : > { %8036 = vmatprep.mubr.f32.mxu1 %v9423_v2 }
  0x4e   : > { %8420 = vmatmul.mubr.f32.vlgmr.msra.gmra.mrb[0].mxu0 %v4264_v61  ;;  %v10692_v61 = vand.u32 4294901760, %v9295_v31  ;;  %v10695_v31 = vand.u32 4294901760, %v9365_v11  ;;  %v10699_v11 = vand.u32 4294901760, %v9426_v4 }
  0x4f   : > { %8422 = vmatprep.mubr.f32.mxu0 %v4274_v47  ;;  %8432 = vmatpush3.msra.mxu0 %v4335_v0  ;;  %v4314_v47 = vand.u32 4294901760, %v4313_v1  ;;  %v10694_v0 = vand.u32 4294901760, %v9319_v44  ;;  %v10698_v44 = vand.u32 4294901760, %v9423_v2 }
  0x50   : > { %8037 = vmatmul.mubr.f32.gmra.mrb[6].mxu1 %v9426_v4  ;;  %8445 = vmatprep.subr.mxu0 %v9451_v9  ;;  %v996_v4 = vsel %vm219_vm1, %v199_v53, 0 }
  0x51   : > { %8041 = vmatprep.mubr.f32.mxu1 %v10692_v61 }
  0x52   : > { %8423 = vmatmul.mubr.f32.gmra.mrb[2].mxu0 %v4284_v14  ;;  %v201_v14 = vld [vmem:[%s9255_s25 + $0x20] sm:$0xff] }
  0x53   : > { %8425 = vmatprep.mubr.f32.mxu0 %v4294_v39  ;;  %v9633_v39 = vand.u32 4294901760, %v996_v4 }
  0x54   : > { %8042 = vmatmul.mubr.f32.vlgmr.msra.gmra.mrb[0].mxu1 %v10693_v35 }
  0x55   : > { %8054 = vmatpush3.msra.mxu1 %v9265_v12  ;;  %8044 = vmatprep.mubr.f32.mxu1 %v10694_v0  ;;  %v207_v12 = vld [vmem:[%s10596_s1] sm:$0xf]  ;;  %v9647_v35 = vsub.f32 %v996_v4, %v9633_v39 }
  0x56   : > { %8426 = vmatmul.mubr.f32.gmra.mrb[4].mxu0 %v4304_v62  ;;  %8067 = vmatprep.subr.mxu1 %v9241_v5  ;;  %v1002_v62 = vsel %vm219_vm1, %v201_v14, 0 }
  0x57   : > { %8428 = vmatprep.mubr.f32.mxu0 %v4314_v47  ;;  %v203_v47 = vld [vmem:[%s9255_s25 + $0x40] sm:$0xff] }
  0x58   : > { %8045 = vmatmul.mubr.f32.gmra.mrb[2].mxu1 %v10695_v31  ;;  %v9653_v31 = vand.u32 4294901760, %v1002_v62 }
  0x59   : > { %8047 = vmatprep.mubr.f32.mxu1 %v10696_v51  ;;  %v1005_v51 = vsel %vm219_vm1, %v202_v15, 0 }
  0x5a   : > { %8429 = vmatmul.mubr.f32.gmra.mrb[6].mxu0 %v4324_v33  ;;  %v1020_v33 = vsel %vm244_vm0, %v207_v12, 0  ;;  %v1008_v12 = vsel %vm219_vm1, %v203_v47, 0  ;;  %v9666_v53 = vand.u32 4294901760, %v1005_v51  ;;  %v9671_v4 = vsub.f32 %v1002_v62, %v9653_v31 }
  0x5b   : > { %8433 = vmatprep.mubr.f32.mxu0 %v9467_v45  ;;  %v9609_v24 = vand.u32 4294901760, %v1020_v33 }
  0x5c   : > { %8048 = vmatmul.mubr.f32.gmra.mrb[4].mxu1 %v10697_v42  ;;  %v9688_v62 = vsub.f32 %v1005_v51, %v9666_v53  ;;  %v9694_v47 = vand.u32 4294901760, %v9671_v4 }
  0x5d   : > { %8050 = vmatprep.mubr.f32.mxu1 %v10698_v44  ;;  %v9619_v2 = vsub.f32 %v1020_v33, %v9609_v24  ;;  %v204_v44 = vld [vmem:[%s9255_s25 + $0x50] sm:$0xff]  ;;  %v205_v33 = vld [vmem:[%s9255_s25 + $0x60] sm:$0xff] }
  0x5e   : > { %8434 = vmatmul.mubr.f32.vlgmr.msra.gmra.mrb[0].mxu0 %v9482_v27  ;;  %v1011_v14 = vsel %vm219_vm1, %v204_v44, 0  ;;  %v9709_v51 = vand.u32 4294901760, %v9688_v62 }
  0x5f   : > { %8436 = vmatprep.mubr.f32.mxu0 %v9485_v22  ;;  %8446 = vmatpush3.msra.mxu0 %v9451_v9  ;;  %v200_v9 = vld [vmem:[%s9255_s25 + $0x10] sm:$0xff]  ;;  %v9690_v15 = vand.u32 4294901760, %v1011_v14 }
  0x60   : > { %8051 = vmatmul.mubr.f32.gmra.mrb[6].mxu1 %v10699_v11  ;;  %8459 = vmatprep.subr.mxu0 %v9443_v46  ;;  %v999_v1 = vsel %vm219_vm1, %v200_v9, 0  ;;  %v10626_v11 = vand.u32 4294901760, %v9647_v35  ;;  %v9673_v9 = vand.u32 4294901760, %v1008_v12 }
  0x61   : > { %8055 = vmatprep.mubr.f32.mxu1 %v9278_v21  ;;  %v9650_v0 = vand.u32 4294901760, %v999_v1 }
  0x62   : > { %8437 = vmatmul.mubr.f32.gmra.mrb[2].mxu0 %v9498_v18  ;;  %v9697_v44 = vsub.f32 %v1008_v12, %v9673_v9  ;;  %v9712_v12 = vsub.f32 %v1011_v14, %v9690_v15  ;;  %v10702_v14 = vand.u32 4294901760, %v9503_v63 }
  0x63   : > { %8439 = vmatprep.mubr.f32.mxu0 %v9505_v7 }
  0x64   : > { %8056 = vmatmul.mubr.f32.vlgmr.msra.gmra.mrb[0].mxu1 %v9299_v34  ;;  %v9736_v26 = vand.u32 4294901760, %v9712_v12 }
  0x65   : > { %8068 = vmatpush3.msra.mxu1 %v9241_v5  ;;  %8058 = vmatprep.mubr.f32.mxu1 %v9303_v36  ;;  %v9627_v5 = vand.u32 4294901760, %v9619_v2 }
  0x66   : > { %8440 = vmatmul.mubr.f32.gmra.mrb[4].mxu0 %v9520_v49  ;;  %8081 = vmatprep.subr.mxu1 %v9609_v24 }
  0x67   : > { %8442 = vmatprep.mubr.f32.mxu0 %v9527_v52  ;;  %v1172_v61 = vsub.f32 %v9619_v2, %v9627_v5 }
  0x68   : > { %8059 = vmatmul.mubr.f32.gmra.mrb[2].mxu1 %v9351_v60 }
  0x69   : > { %8061 = vmatprep.mubr.f32.mxu1 %v9367_v13  ;;  %v1173_v42 = vand.u32 4294901760, %v1172_v61 }
  0x6a   : > { %8443 = vmatmul.mubr.f32.gmra.mrb[6].mxu0 %v9542_v58 }
  0x6b   : > { %8447 = vmatprep.mubr.f32.mxu0 %v9480_v54 }
  0x6c   : > { %8062 = vmatmul.mubr.f32.gmra.mrb[4].mxu1 %v9384_v25 }
  0x6d   : > { %8064 = vmatprep.mubr.f32.mxu1 %v9408_v55 }
  0x6e   : > { %8448 = vmatmul.mubr.f32.vlgmr.msra.gmra.mrb[0].mxu0 %v9496_v37 }
  0x6f   : > { %8450 = vmatprep.mubr.f32.mxu0 %v9503_v63  ;;  %8460 = vmatpush3.msra.mxu0 %v9443_v46  ;;  %v10704_v63 = vand.u32 4294901760, %v9525_v23 }
  0x70   : > { %8065 = vmatmul.mubr.f32.gmra.mrb[6].mxu1 %v9410_v57  ;;  %8473 = vmatprep.subr.mxu0 %v9460_v40 }
  0x71   : > { %8069 = vmatprep.mubr.f32.mxu1 %v9278_v21  ;;  %v9664_v21 = vsub.f32 %v999_v1, %v9650_v0  ;;  %v206_v1 = vld [vmem:[%s9255_s25 + $0x70] sm:$0xff] }
  0x72   : > { %8451 = vmatmul.mubr.f32.gmra.mrb[2].mxu0 %v9518_v48 }
  0x73   : > { %8453 = vmatprep.mubr.f32.mxu0 %v9525_v23  ;;  %v9685_v61 = vand.u32 4294901760, %v9664_v21  ;;  %v10705_v23 = vand.u32 4294901760, %v9540_v10 }
  0x74   : > { %8070 = vmatmul.mubr.f32.vlgmr.msra.gmra.mrb[0].mxu1 %v9299_v34  ;;  %v1014_v34 = vsel %vm219_vm1, %v205_v33, 0  ;;  %v1017_v33 = vsel %vm219_vm1, %v206_v1, 0 }
  0x75   : > { %8082 = vmatpush3.msra.mxu1 %v9609_v24  ;;  %8072 = vmatprep.mubr.f32.mxu1 %v9303_v36  ;;  %v1091_v36 = vsub.f32 %v9647_v35, %v10626_v11  ;;  %v10700_v11 = vand.u32 4294901760, %v9480_v54  ;;  %v9714_v50 = vand.u32 4294901760, %v1017_v33  ;;  %v1111_v54 = vsub.f32 %v9671_v4, %v9694_v47 }
  0x76   : > { %8454 = vmatmul.mubr.f32.gmra.mrb[4].mxu0 %v9540_v10  ;;  %8095 = vmatprep.subr.mxu1 %v1173_v42 }
  0x77   : > { %8456 = vmatprep.mubr.f32.mxu0 %v9550_v59  ;;  %v1092_v1 = vand.u32 4294901760, %v1091_v36  ;;  %v1121_v36 = vsub.f32 %v9688_v62, %v9709_v51  ;;  %v9742_v37 = vand.u32 4294901760, %v1111_v54 }
  0x78   : > { %8073 = vmatmul.mubr.f32.gmra.mrb[2].mxu1 %v9351_v60  ;;  %v9699_v60 = vand.u32 4294901760, %v1014_v34 }
  0x79   : > { %8075 = vmatprep.mubr.f32.mxu1 %v9367_v13  ;;  %v1101_v13 = vsub.f32 %v9664_v21, %v9685_v61 }
  0x7a   : > { %8457 = vmatmul.mubr.f32.gmra.mrb[6].mxu0 %v9560_v38 }
  0x7b   : > { %8461 = vmatprep.mubr.f32.mxu0 %v10700_v11  ;;  %v9720_v11 = vand.u32 4294901760, %v9697_v44 }
  0x7c   : > { %8076 = vmatmul.mubr.f32.gmra.mrb[4].mxu1 %v9384_v25  ;;  %v9723_v25 = vsub.f32 %v1014_v34, %v9699_v60  ;;  %v9739_v34 = vsub.f32 %v1017_v33, %v9714_v50  ;;  %v9754_v33 = vand.u32 4294901760, %v1121_v36  ;;  %v10706_v36 = vand.u32 4294901760, %v9550_v59 }
  0x7d   : > { %8078 = vmatprep.mubr.f32.mxu1 %v9408_v55  ;;  %v9731_v55 = vand.u32 4294901760, %v1101_v13  ;;  %v1141_v13 = vsub.f32 %v9712_v12, %v9736_v26 }
  0x7e   : > { %8462 = vmatmul.mubr.f32.vlgmr.msra.gmra.mrb[0].mxu0 %v10701_v17  ;;  %v1131_v17 = vsub.f32 %v9697_v44, %v9720_v11 }
  0x7f   : > { %8464 = vmatprep.mubr.f32.mxu0 %v10702_v14  ;;  %8474 = vmatpush3.msra.mxu0 %v9460_v40  ;;  %v10703_v40 = vand.u32 4294901760, %v9518_v48  ;;  %v7488_v14 = vld [vmem:[%s10596_s1 + $0x18] sm:$0xf] }
  0x80   : > { %8079 = vmatmul.mubr.f32.gmra.mrb[6].mxu1 %v9410_v57  ;;  %8487 = vmatprep.subr.mxu0 %v9443_v46  ;;  %v9747_v57 = vand.u32 4294901760, %v9723_v25  ;;  %v9762_v54 = vand.u32 4294901760, %v1131_v17 }
  0x81   : > { %8083 = vmatprep.mubr.f32.mxu1 %v1092_v1  ;;  %v9759_v1 = vand.u32 4294901760, %v9739_v34 }
  0x82   : > { %8465 = vmatmul.mubr.f32.gmra.mrb[2].mxu0 %v10703_v40  ;;  %v1151_v48 = vsub.f32 %v9723_v25, %v9747_v57  ;;  %v4975_v40 = vsel %vm244_vm0, %v7488_v14, 0  ;;  %v1771_v14 = vld [vmem:[%s9255_s25 + $0x21] sm:$0xff] }
  0x83   : > { %8467 = vmatprep.mubr.f32.mxu0 %v10704_v63  ;;  %v1161_v17 = vsub.f32 %v9739_v34, %v9759_v1  ;;  %v10707_v63 = vand.u32 4294901760, %v9560_v38 }
  0x84   : > { %8084 = vmatmul.mubr.f32.vlgmr.msra.gmra.mrb[0].mxu1 %v9731_v55  ;;  %v9780_v10 = vand.u32 4294901760, %v1151_v48 }
  0x85   : > { %8096 = vmatpush3.msra.mxu1 %v1173_v42  ;;  %8086 = vmatprep.mubr.f32.mxu1 %v9742_v37  ;;  %v9775_v42 = vand.u32 4294901760, %v1141_v13  ;;  %v9787_v59 = vand.u32 4294901760, %v1161_v17  ;;  %v9789_v13 = vand.u32 4294901760, %v4975_v40 }
  0x86   : > { %8468 = vmatmul.mubr.f32.gmra.mrb[4].mxu0 %v10705_v23  ;;  %8109 = vmatprep.subr.mxu1 %v9619_v2  ;;  %v7487_v23 = vld [vmem:[%s9255_s25 + $0x80] sm:$0xff] }
  0x87   : > { %8470 = vmatprep.mubr.f32.mxu0 %v10706_v36  ;;  %v9798_v38 = vsub.f32 %v4975_v40, %v9789_v13  ;;  %v1772_v40 = vld [vmem:[%s9255_s25 + $0x31] sm:$0xff] }
  0x88   : > { %8087 = vmatmul.mubr.f32.gmra.mrb[2].mxu1 %v9754_v33 }
  0x89   : > { %8089 = vmatprep.mubr.f32.mxu1 %v9762_v54  ;;  %v9805_v48 = vand.u32 4294901760, %v9798_v38 }
  0x8a   : > { %8471 = vmatmul.mubr.f32.gmra.mrb[6].mxu0 %v10707_v63 }
  0x8b   : > { %8475 = vmatprep.mubr.f32.mxu0 %v9467_v45 }
  0x8c   : > { %8090 = vmatmul.mubr.f32.gmra.mrb[4].mxu1 %v9775_v42 }
  0x8d   : > { %8092 = vmatprep.mubr.f32.mxu1 %v9780_v10 }
  0x8e   : > { %8476 = vmatmul.mubr.f32.vlgmr.msra.gmra.mrb[0].mxu0 %v9482_v27 }
  0x8f   : > { %8478 = vmatprep.mubr.f32.mxu0 %v9485_v22  ;;  %8488 = vmatpush3.msra.mxu0 %v9443_v46  ;;  %v5127_v46 = vsub.f32 %v9798_v38, %v9805_v48 }
  0x90   : > { %8093 = vmatmul.mubr.f32.gmra.mrb[6].mxu1 %v9787_v59  ;;  %8501 = vmatprep.subr.mxu0 %v9789_v13 }
  0x91   : > { %8097 = vmatprep.mubr.f32.mxu1 %v9633_v39 }
  0x92   : > { %8479 = vmatmul.mubr.f32.gmra.mrb[2].mxu0 %v9498_v18 }
  0x93   : > { %8481 = vmatprep.mubr.f32.mxu0 %v9505_v7 }
  0x94   : > { %8098 = vmatmul.mubr.f32.vlgmr.msra.gmra.mrb[0].mxu1 %v9650_v0 }
  0x95   : > { %8110 = vmatpush3.msra.mxu1 %v9619_v2  ;;  %8100 = vmatprep.mubr.f32.mxu1 %v9653_v31  ;;  %v5128_v2 = vand.u32 4294901760, %v5127_v46 }
  0x96   : > { %8482 = vmatmul.mubr.f32.gmra.mrb[4].mxu0 %v9520_v49  ;;  %8123 = vmatprep.subr.mxu1 %v9609_v24 }
  0x97   : > { %8484 = vmatprep.mubr.f32.mxu0 %v9527_v52 }
  0x98   : > { %8101 = vmatmul.mubr.f32.gmra.mrb[2].mxu1 %v9666_v53 }
  0x99   : > { %8103 = vmatprep.mubr.f32.mxu1 %v9673_v9 }
  0x9a   : > { %8485 = vmatmul.mubr.f32.gmra.mrb[6].mxu0 %v9542_v58 }
  0x9b   : > { %8489 = vmatprep.mubr.f32.mxu0 %v9467_v45  ;;  %v4972_v45 = vsel %vm219_vm1, %v7487_v23, 0  ;;  %v1775_v23 = vld [vmem:[%s9255_s25 + $0x61] sm:$0xff] }
  0x9c   : > { %8104 = vmatmul.mubr.f32.gmra.mrb[4].mxu1 %v9690_v15 }
  0x9d   : > { %8106 = vmatprep.mubr.f32.mxu1 %v9699_v60 }
  0x9e   : > { %8490 = vmatmul.mubr.f32.vlgmr.msra.gmra.mrb[0].mxu0 %v9482_v27  ;;  %v9834_v27 = vand.u32 4294901760, %v4972_v45 }
  0x9f   : > { %8492 = vmatprep.mubr.f32.mxu0 %v9485_v22  ;;  %8502 = vmatpush3.msra.mxu0 %v9789_v13 }
  0xa0   : > { %8107 = vmatmul.mubr.f32.gmra.mrb[6].mxu1 %v9714_v50  ;;  %8515 = vmatprep.subr.mxu0 %v5128_v2 }
  0xa1   : > { %8111 = vmatprep.mubr.f32.mxu1 %v9647_v35 }
  0xa2   : > { %8493 = vmatmul.mubr.f32.gmra.mrb[2].mxu0 %v9498_v18  ;;  %v9841_v18 = vsub.f32 %v4972_v45, %v9834_v27 }
  0xa3   : > { %8495 = vmatprep.mubr.f32.mxu0 %v9505_v7 }
  0xa4   : > { %8112 = vmatmul.mubr.f32.vlgmr.msra.gmra.mrb[0].mxu1 %v9664_v21  ;;  %v5115_v22 = vand.u32 4294901760, %v9841_v18 }
  0xa5   : > { %8124 = vmatpush3.msra.mxu1 %v9609_v24  ;;  %8114 = vmatprep.mubr.f32.mxu1 %v9671_v4 }
  0xa6   : > { %8496 = vmatmul.mubr.f32.gmra.mrb[4].mxu0 %v9520_v49  ;;  %8137 = vmatprep.subr.mxu1 %v9627_v5  ;;  %v5116_v7 = vsub.f32 %v9841_v18, %v5115_v22 }
  0xa7   : > { %8498 = vmatprep.mubr.f32.mxu0 %v9527_v52  ;;  %v10708_v52 = vand.u32 4294901760, %v9647_v35 }
  0xa8   : > { %8115 = vmatmul.mubr.f32.gmra.mrb[2].mxu1 %v9688_v62  ;;  %v5117_v49 = vand.u32 4294901760, %v5116_v7 }
  0xa9   : > { %8117 = vmatprep.mubr.f32.mxu1 %v9697_v44 }
  0xaa   : > { %8499 = vmatmul.mubr.f32.gmra.mrb[6].mxu0 %v9542_v58  ;;  %v7452_v58 = vld [vmem:[%s10596_s1 + $0x8] sm:$0xf] }
  0xab   : > { %8503 = vmatprep.mubr.f32.mxu0 %v9731_v55  ;;  %v1769_v55 = vld [vmem:[%s9255_s25 + $0x1] sm:$0xff] }
  0xac   : > { %8118 = vmatmul.mubr.f32.gmra.mrb[4].mxu1 %v9712_v12 }
  0xad   : > { %8120 = vmatprep.mubr.f32.mxu1 %v9723_v25 }
  0xae   : > { %8504 = vmatmul.mubr.f32.vlgmr.msra.gmra.mrb[0].mxu0 %v9742_v37 }
  0xaf   : > { %8506 = vmatprep.mubr.f32.mxu0 %v9754_v33  ;;  %8516 = vmatpush3.msra.mxu0 %v5128_v2  ;;  %v1780_v33 = vsel %vm219_vm1, %v1769_v55, 0  ;;  %v1774_v2 = vld [vmem:[%s9255_s25 + $0x51] sm:$0xff] }
  0xb0   : > { %8121 = vmatmul.mubr.f32.gmra.mrb[6].mxu1 %v9739_v34  ;;  %8529 = vmatprep.subr.mxu0 %v9798_v38  ;;  %v9904_v36 = vand.u32 4294901760, %v1780_v33 }
  0xb1   : > { %8125 = vmatprep.mubr.f32.mxu1 %v10708_v52 }
  0xb2   : > { %8507 = vmatmul.mubr.f32.gmra.mrb[2].mxu0 %v9762_v54  ;;  %v1770_v54 = vld [vmem:[%s9255_s25 + $0x11] sm:$0xff]  ;;  %v9918_v63 = vsub.f32 %v1780_v33, %v9904_v36 }
  0xb3   : > { %8509 = vmatprep.mubr.f32.mxu0 %v9775_v42  ;;  %v1783_v42 = vsel %vm219_vm1, %v1770_v54, 0 }
  0xb4   : > { %8126 = vmatmul.mubr.f32.vlgmr.msra.gmra.mrb[0].mxu1 %v9685_v61  ;;  %v10630_v45 = vand.u32 4294901760, %v9918_v63 }
  0xb5   : > { %8138 = vmatpush3.msra.mxu1 %v9627_v5  ;;  %8128 = vmatprep.mubr.f32.mxu1 %v9694_v47  ;;  %v1804_v5 = vsel %vm244_vm0, %v7452_v58, 0  ;;  %v1776_v58 = vld [vmem:[%s9255_s25 + $0x71] sm:$0xff] }
  0xb6   : > { %8510 = vmatmul.mubr.f32.gmra.mrb[4].mxu0 %v9780_v10  ;;  %8151 = vmatprep.subr.mxu1 %v9609_v24  ;;  %v9880_v35 = vand.u32 4294901760, %v1804_v5  ;;  %v1786_v10 = vsel %vm219_vm1, %v1771_v14, 0 }
  0xb7   : > { %8512 = vmatprep.mubr.f32.mxu0 %v9787_v59  ;;  %v9924_v59 = vand.u32 4294901760, %v1786_v10 }
  0xb8   : > { %8129 = vmatmul.mubr.f32.gmra.mrb[2].mxu1 %v9709_v51  ;;  %v9890_v37 = vsub.f32 %v1804_v5, %v9880_v35  ;;  %v1875_v5 = vsub.f32 %v9918_v63, %v10630_v45  ;;  %v7492_v45 = vld [vmem:[%s9255_s25 + $0xd0] sm:$0xff] }
  0xb9   : > { %8131 = vmatprep.mubr.f32.mxu1 %v9720_v11 }
  0xba   : > { %8513 = vmatmul.mubr.f32.gmra.mrb[6].mxu0 %v5117_v49  ;;  %v1798_v49 = vsel %vm219_vm1, %v1775_v23, 0 }
  0xbb   : > { %8517 = vmatprep.mubr.f32.mxu0 %v9650_v0  ;;  %v9970_v14 = vand.u32 4294901760, %v1798_v49 }
  0xbc   : > { %8132 = vmatmul.mubr.f32.gmra.mrb[4].mxu1 %v9736_v26 }
  0xbd   : > { %8134 = vmatprep.mubr.f32.mxu1 %v9747_v57 }
  0xbe   : > { %8518 = vmatmul.mubr.f32.vlgmr.msra.gmra.mrb[0].mxu0 %v9653_v31 }
  0xbf   : > { %8520 = vmatprep.mubr.f32.mxu0 %v9666_v53  ;;  %8530 = vmatpush3.msra.mxu0 %v9798_v38  ;;  %v1789_v38 = vsel %vm219_vm1, %v1772_v40, 0 }
  0xc0   : > { %8135 = vmatmul.mubr.f32.gmra.mrb[6].mxu1 %v9759_v1  ;;  %8543 = vmatprep.subr.mxu0 %v9789_v13  ;;  %v9937_v52 = vand.u32 4294901760, %v1789_v38 }
  0xc1   : > { %8139 = vmatprep.mubr.f32.mxu1 %v9633_v39 }
  0xc2   : > { %8521 = vmatmul.mubr.f32.gmra.mrb[2].mxu0 %v9673_v9  ;;  %v9959_v33 = vsub.f32 %v1789_v38, %v9937_v52  ;;  %v1876_v38 = vand.u32 4294901760, %v1875_v5 }
  0xc3   : > { %8523 = vmatprep.mubr.f32.mxu0 %v9690_v15 }
  0xc4   : > { %8140 = vmatmul.mubr.f32.vlgmr.msra.gmra.mrb[0].mxu1 %v9650_v0  ;;  %10710 = vst [vmem:[#allocation21_spill] sm:$0xff] %v9959_v33 }
  0xc5   : > { %8152 = vmatpush3.msra.mxu1 %v9609_v24  ;;  %8142 = vmatprep.mubr.f32.mxu1 %v9653_v31  ;;  %v9898_v24 = vand.u32 4294901760, %v9890_v37 }
  0xc6   : > { %8524 = vmatmul.mubr.f32.gmra.mrb[4].mxu0 %v9699_v60  ;;  %8165 = vmatprep.subr.mxu1 %v9880_v35 }
  0xc7   : > { %8526 = vmatprep.mubr.f32.mxu0 %v9714_v50  ;;  %v1956_v17 = vsub.f32 %v9890_v37, %v9898_v24 }
  0xc8   : > { %8143 = vmatmul.mubr.f32.gmra.mrb[2].mxu1 %v9666_v53 }
  0xc9   : > { %8145 = vmatprep.mubr.f32.mxu1 %v9673_v9 }
  0xca   : > { %8527 = vmatmul.mubr.f32.gmra.mrb[6].mxu0 %v9834_v27 }
  0xcb   : > { %8531 = vmatprep.mubr.f32.mxu0 %v9664_v21  ;;  %v1773_v21 = vld [vmem:[%s9255_s25 + $0x41] sm:$0xff] }
  0xcc   : > { %8146 = vmatmul.mubr.f32.gmra.mrb[4].mxu1 %v9690_v15  ;;  %v1792_v46 = vsel %vm219_vm1, %v1773_v21, 0 }
  0xcd   : > { %8148 = vmatprep.mubr.f32.mxu1 %v9699_v60  ;;  %v9944_v7 = vand.u32 4294901760, %v1792_v46 }
  0xce   : > { %8532 = vmatmul.mubr.f32.vlgmr.msra.gmra.mrb[0].mxu0 %v9671_v4  ;;  %v9921_v4 = vand.u32 4294901760, %v1783_v42 }
  0xcf   : > { %8534 = vmatprep.mubr.f32.mxu0 %v9688_v62  ;;  %8544 = vmatpush3.msra.mxu0 %v9789_v13  ;;  %v1957_v62 = vand.u32 4294901760, %v1956_v17 }
  0xd0   : > { %8149 = vmatmul.mubr.f32.gmra.mrb[6].mxu1 %v9714_v50  ;;  %8557 = vmatprep.subr.mxu0 %v9805_v48 }
  0xd1   : > { %8153 = vmatprep.mubr.f32.mxu1 %v9633_v39  ;;  %v9935_v39 = vsub.f32 %v1783_v42, %v9921_v4  ;;  %v1801_v42 = vsel %vm219_vm1, %v1776_v58, 0 }
  0xd2   : > { %8535 = vmatmul.mubr.f32.gmra.mrb[2].mxu0 %v9697_v44  ;;  %v9942_v44 = vsub.f32 %v1786_v10, %v9924_v59  ;;  %v9979_v10 = vand.u32 4294901760, %v9959_v33  ;;  %v9984_v21 = vand.u32 4294901760, %v1801_v42 }
  0xd3   : > { %8537 = vmatprep.mubr.f32.mxu0 %v9712_v12  ;;  %v1795_v12 = vsel %vm219_vm1, %v1774_v2, 0  ;;  %v9956_v55 = vand.u32 4294901760, %v9935_v39  ;;  %v9993_v2 = vsub.f32 %v1798_v49, %v9970_v14 }
  0xd4   : > { %8154 = vmatmul.mubr.f32.vlgmr.msra.gmra.mrb[0].mxu1 %v9650_v0  ;;  %v9961_v54 = vand.u32 4294901760, %v1795_v12  ;;  %10713 = vst [vmem:[#allocation24_spill] sm:$0xff] %v9979_v10  ;;  %v10007_v5 = vsub.f32 %v1801_v42, %v9984_v21 }
  0xd5   : > { %8166 = vmatpush3.msra.mxu1 %v9880_v35  ;;  %8156 = vmatprep.mubr.f32.mxu1 %v9653_v31  ;;  %10709 = vst [vmem:[#allocation20_spill] sm:$0xff] %v9956_v55  ;;  %v1885_v17 = vsub.f32 %v9935_v39, %v9956_v55  ;;  %10716 = vst [vmem:[#allocation27_spill] sm:$0xff] %v9993_v2 }
  0xd6   : > { %8538 = vmatmul.mubr.f32.gmra.mrb[4].mxu0 %v9723_v25  ;;  %8179 = vmatprep.subr.mxu1 %v1957_v62  ;;  %v9965_v25 = vand.u32 4294901760, %v9942_v44  ;;  %v9982_v40 = vsub.f32 %v1795_v12, %v9961_v54  ;;  %v1905_v12 = vsub.f32 %v9959_v33, %v9979_v10  ;;  %10718 = vst [vmem:[#allocation29_spill] sm:$0xff] %v10007_v5 }
  0xd7   : > { %8540 = vmatprep.mubr.f32.mxu0 %v9739_v34  ;;  %v9968_v34 = vsub.f32 %v1792_v46, %v9944_v7  ;;  %v9999_v23 = vand.u32 4294901760, %v1885_v17  ;;  %v10025_v17 = vand.u32 4294901760, %v10007_v5 }
  0xd8   : > { %8157 = vmatmul.mubr.f32.gmra.mrb[2].mxu1 %v9666_v53  ;;  %10711 = vst [vmem:[#allocation22_spill] sm:$0xff] %v9965_v25  ;;  %10714 = vst [vmem:[#allocation25_spill] sm:$0xff] %v9982_v40  ;;  %v1895_v46 = vsub.f32 %v9942_v44, %v9965_v25  ;;  %v10004_v58 = vand.u32 4294901760, %v9982_v40  ;;  %v10020_v49 = vand.u32 4294901760, %v1905_v12 }
  0xd9   : > { %8159 = vmatprep.mubr.f32.mxu1 %v9673_v9  ;;  %10712 = vst [vmem:[#allocation23_spill] sm:$0xff] %v9968_v34  ;;  %10720 = vst [vmem:[#allocation31_spill] sm:$0xff] %v10025_v17 }
  0xda   : > { %8541 = vmatmul.mubr.f32.gmra.mrb[6].mxu0 %v9841_v18  ;;  %10717 = vst [vmem:[#allocation28_spill] sm:$0xff] %v10004_v58  ;;  %v1925_v42 = vsub.f32 %v9982_v40, %v10004_v58  ;;  %v7489_v18 = vld [vmem:[%s9255_s25 + $0xa0] sm:$0xff] }
  0xdb   : > { %8545 = vmatprep.mubr.f32.mxu0 %v9685_v61  ;;  %v9990_v61 = vand.u32 4294901760, %v9968_v34 }
  0xdc   : > { %8160 = vmatmul.mubr.f32.gmra.mrb[4].mxu1 %v9690_v15 }
  0xdd   : > { %8162 = vmatprep.mubr.f32.mxu1 %v9699_v60  ;;  %10715 = vst [vmem:[#allocation26_spill] sm:$0xff] %v9990_v61 }
  0xde   : > { %8546 = vmatmul.mubr.f32.vlgmr.msra.gmra.mrb[0].mxu0 %v9694_v47  ;;  %v10010_v47 = vand.u32 4294901760, %v1895_v46  ;;  %v1945_v46 = vsub.f32 %v10007_v5, %v10025_v17 }
  0xdf   : > { %8548 = vmatprep.mubr.f32.mxu0 %v9709_v51  ;;  %8558 = vmatpush3.msra.mxu0 %v9805_v48  ;;  %v1915_v51 = vsub.f32 %v9968_v34, %v9990_v61  ;;  %v10015_v48 = vand.u32 4294901760, %v9993_v2 }
  0xe0   : > { %8163 = vmatmul.mubr.f32.gmra.mrb[6].mxu1 %v9714_v50  ;;  %8571 = vmatprep.subr.mxu0 %v9789_v13 }
  0xe1   : > { %8167 = vmatprep.mubr.f32.mxu1 %v1876_v38  ;;  %10719 = vst [vmem:[#allocation30_spill] sm:$0xff] %v10015_v48  ;;  %v10028_v38 = vand.u32 4294901760, %v1915_v51 }
  0xe2   : > { %8549 = vmatmul.mubr.f32.gmra.mrb[2].mxu0 %v9720_v11  ;;  %v1935_v11 = vsub.f32 %v9993_v2, %v10015_v48 }
  0xe3   : > { %8551 = vmatprep.mubr.f32.mxu0 %v9736_v26  ;;  %v7497_v26 = vld [vmem:[%s10596_s1 + $0x1c] sm:$0xf] }
  0xe4   : > { %8168 = vmatmul.mubr.f32.vlgmr.msra.gmra.mrb[0].mxu1 %v9999_v23  ;;  %v10044_v12 = vand.u32 4294901760, %v1935_v11 }
  0xe5   : > { %8180 = vmatpush3.msra.mxu1 %v1957_v62  ;;  %8170 = vmatprep.mubr.f32.mxu1 %v10010_v47  ;;  %v10039_v62 = vand.u32 4294901760, %v1925_v42  ;;  %v5744_v42 = vsel %vm219_vm1, %v7489_v18, 0 }
  0xe6   : > { %8552 = vmatmul.mubr.f32.gmra.mrb[4].mxu0 %v9747_v57  ;;  %8193 = vmatprep.subr.mxu1 %v9890_v37  ;;  %v5768_v57 = vsel %vm244_vm0, %v7497_v26, 0  ;;  %v7491_v26 = vld [vmem:[%s9255_s25 + $0xc0] sm:$0xff] }
  0xe7   : > { %8554 = vmatprep.mubr.f32.mxu0 %v9759_v1  ;;  %v10051_v1 = vand.u32 4294901760, %v1945_v46  ;;  %v10053_v51 = vand.u32 4294901760, %v5768_v57  ;;  %v10079_v46 = vand.u32 4294901760, %v5744_v42  ;;  %v5750_v18 = vsel %vm219_vm1, %v7491_v26, 0 }
  0xe8   : > { %8171 = vmatmul.mubr.f32.gmra.mrb[2].mxu1 %v10020_v49  ;;  %v5753_v26 = vsel %vm219_vm1, %v7492_v45, 0  ;;  %v10117_v45 = vand.u32 4294901760, %v5756_v16 }
  0xe9   : > { %8173 = vmatprep.mubr.f32.mxu1 %v10028_v38  ;;  %v10092_v19 = vsub.f32 %v5744_v42, %v10079_v46  ;;  %v10110_v41 = vand.u32 4294901760, %v5753_v26 }
  0xea   : > { %8555 = vmatmul.mubr.f32.gmra.mrb[6].mxu0 %v5115_v22  ;;  %v10063_v22 = vsub.f32 %v5768_v57, %v10053_v51  ;;  %v10137_v29 = vsub.f32 %v5756_v16, %v10117_v45 }
  0xeb   : > { %8559 = vmatprep.mubr.f32.mxu0 %v9650_v0  ;;  %v10651_v42 = vand.u32 4294901760, %v10092_v19  ;;  %v10130_v30 = vsub.f32 %v5753_v26, %v10110_v41 }
  0xec   : > { %8174 = vmatmul.mubr.f32.gmra.mrb[4].mxu1 %v10039_v62  ;;  %v10072_v11 = vand.u32 4294901760, %v10063_v22 }
  0xed   : > { %8176 = vmatprep.mubr.f32.mxu1 %v10044_v12  ;;  %v10660_v16 = vand.u32 4294901760, %v10130_v30 }
  0xee   : > { %8560 = vmatmul.mubr.f32.vlgmr.msra.gmra.mrb[0].mxu0 %v9653_v31 }
  0xef   : > { %8562 = vmatprep.mubr.f32.mxu0 %v9666_v53  ;;  %8572 = vmatpush3.msra.mxu0 %v9789_v13  ;;  %v7490_v13 = vld [vmem:[%s9255_s25 + $0xb0] sm:$0xff] }
  0xf0   : > { %8177 = vmatmul.mubr.f32.gmra.mrb[6].mxu1 %v10051_v1  ;;  %8585 = vmatprep.subr.mxu0 %v10053_v51  ;;  %v5747_v57 = vsel %vm219_vm1, %v7490_v13, 0  ;;  %v10097_v13 = vand.u32 4294901760, %v5750_v18 }
  0xf1   : > { %8181 = vmatprep.mubr.f32.mxu1 %v9904_v36  ;;  %v10094_v32 = vand.u32 4294901760, %v5747_v57 }
  0xf2   : > { %8563 = vmatmul.mubr.f32.gmra.mrb[2].mxu0 %v9673_v9  ;;  %v10115_v20 = vsub.f32 %v5750_v18, %v10097_v13 }
  0xf3   : > { %8565 = vmatprep.mubr.f32.mxu0 %v9690_v15 }
  0xf4   : > { %8182 = vmatmul.mubr.f32.vlgmr.msra.gmra.mrb[0].mxu1 %v9921_v4 }
  0xf5   : > { %8194 = vmatpush3.msra.mxu1 %v9890_v37  ;;  %8184 = vmatprep.mubr.f32.mxu1 %v9924_v59  ;;  %v5920_v37 = vsub.f32 %v10063_v22, %v10072_v11 }
  0xf6   : > { %8566 = vmatmul.mubr.f32.gmra.mrb[4].mxu0 %v9699_v60  ;;  %8207 = vmatprep.subr.mxu1 %v9880_v35 }
  0xf7   : > { %8568 = vmatprep.mubr.f32.mxu0 %v9714_v50  ;;  %v5921_v28 = vand.u32 4294901760, %v5920_v37  ;;  %v5759_v37 = vsel %vm219_vm1, %v7494_v56, 0 }
  0xf8   : > { %8185 = vmatmul.mubr.f32.gmra.mrb[2].mxu1 %v9937_v52  ;;  %v10132_v56 = vand.u32 4294901760, %v5759_v37 }
  0xf9   : > { %8187 = vmatprep.mubr.f32.mxu1 %v9944_v7 }
  0xfa   : > { %8569 = vmatmul.mubr.f32.gmra.mrb[6].mxu0 %v9834_v27  ;;  %v10152_v26 = vsub.f32 %v5759_v37, %v10132_v56 }
  0xfb   : > { %8573 = vmatprep.mubr.f32.mxu0 %v9650_v0  ;;  %v10108_v0 = vsub.f32 %v5747_v57, %v10094_v32  ;;  %v7496_v57 = vld [vmem:[%s9255_s25 + $0x110] sm:$0xff] }
  0xfc   : > { %8188 = vmatmul.mubr.f32.gmra.mrb[4].mxu1 %v9961_v54 }
  0xfd   : > { %8190 = vmatprep.mubr.f32.mxu1 %v9970_v14  ;;  %v10653_v18 = vand.u32 4294901760, %v10108_v0 }
  0xfe   : > { %8574 = vmatmul.mubr.f32.vlgmr.msra.gmra.mrb[0].mxu0 %v9653_v31  ;;  %v5762_v31 = vsel %vm219_vm1, %v7495_v43, 0  ;;  %v10654_v43 = vand.u32 4294901760, %v10115_v20 }
  0xff   : > { %8576 = vmatprep.mubr.f32.mxu0 %v9666_v53  ;;  %8586 = vmatpush3.msra.mxu0 %v10053_v51  ;;  %v5839_v53 = vsub.f32 %v10092_v19, %v10651_v42  ;;  %v10139_v6 = vand.u32 4294901760, %v5762_v31 }
 0x100   : > { %8191 = vmatmul.mubr.f32.gmra.mrb[6].mxu1 %v9984_v21  ;;  %8599 = vmatprep.subr.mxu0 %v5921_v28 }
 0x101   : > { %8195 = vmatprep.mubr.f32.mxu1 %v9918_v63  ;;  %v5840_v42 = vand.u32 4294901760, %v5839_v53  ;;  %v10659_v53 = vand.u32 4294901760, %v10152_v26 }
 0x102   : > { %8577 = vmatmul.mubr.f32.gmra.mrb[2].mxu0 %v9673_v9  ;;  %v5765_v9 = vsel %vm219_vm1, %v7496_v57, 0 }
 0x103   : > { %8579 = vmatprep.mubr.f32.mxu0 %v9690_v15  ;;  %v5849_v15 = vsub.f32 %v10108_v0, %v10653_v18  ;;  %v10154_v57 = vand.u32 4294901760, %v5765_v9  ;;  %v10162_v18 = vsub.f32 %v5762_v31, %v10139_v6  ;;  %v10721_v31 = vand.u32 4294901760, %v10137_v29 }
 0x104   : > { %8196 = vmatmul.mubr.f32.vlgmr.msra.gmra.mrb[0].mxu1 %v9935_v39 }
 0x105   : > { %8208 = vmatpush3.msra.mxu1 %v9880_v35  ;;  %8198 = vmatprep.mubr.f32.mxu1 %v9942_v44  ;;  %v5850_v37 = vand.u32 4294901760, %v5849_v15  ;;  %v5889_v15 = vsub.f32 %v10152_v26, %v10659_v53  ;;  %v7458_v53 = vld [vmem:[%s9255_s25 + $0x170] sm:$0xff] }
 0x106   : > { %8580 = vmatmul.mubr.f32.gmra.mrb[4].mxu0 %v9699_v60  ;;  %8221 = vmatprep.subr.mxu1 %v9898_v24  ;;  %v5859_v60 = vsub.f32 %v10115_v20, %v10654_v43  ;;  %v10172_v43 = vsub.f32 %v5765_v9, %v10154_v57 }
 0x107   : > { %8582 = vmatprep.mubr.f32.mxu0 %v9714_v50  ;;  %v5869_v50 = vsub.f32 %v10130_v30, %v10660_v16 }
 0x108   : > { %8199 = vmatmul.mubr.f32.gmra.mrb[2].mxu1 %v9959_v33  ;;  %v5860_v8 = vand.u32 4294901760, %v5859_v60  ;;  %v5879_v33 = vsub.f32 %v10137_v29, %v10721_v31  ;;  %v10657_v9 = vand.u32 4294901760, %v10172_v43 }
 0x109   : > { %8201 = vmatprep.mubr.f32.mxu1 %v9968_v34  ;;  %v10658_v34 = vand.u32 4294901760, %v10162_v18 }
 0x10a   : > { %8583 = vmatmul.mubr.f32.gmra.mrb[6].mxu0 %v9834_v27  ;;  %v5870_v27 = vand.u32 4294901760, %v5869_v50  ;;  %v5890_v50 = vand.u32 4294901760, %v5889_v15  ;;  %v5909_v31 = vsub.f32 %v10172_v43, %v10657_v9 }
 0x10b   : > { %8587 = vmatprep.mubr.f32.mxu0 %v5840_v42  ;;  %v5880_v42 = vand.u32 4294901760, %v5879_v33  ;;  %v5899_v60 = vsub.f32 %v10162_v18, %v10658_v34 }
 0x10c   : > { %8202 = vmatmul.mubr.f32.gmra.mrb[4].mxu1 %v9982_v40 }
 0x10d   : > { %8204 = vmatprep.mubr.f32.mxu1 %v9993_v2 }
 0x10e   : > { %8588 = vmatmul.mubr.f32.vlgmr.msra.gmra.mrb[0].mxu0 %v5850_v37  ;;  %v10722_v37 = vand.u32 4294901760, %v9918_v63 }
 0x10f   : > { %8590 = vmatprep.mubr.f32.mxu0 %v5860_v8  ;;  %8600 = vmatpush3.msra.mxu0 %v5921_v28  ;;  %v5900_v8 = vand.u32 4294901760, %v5899_v60  ;;  %v5910_v28 = vand.u32 4294901760, %v5909_v31  ;;  %v7455_v60 = vld [vmem:[%s9255_s25 + $0x140] sm:$0xff] }
 0x110   : > { %8205 = vmatmul.mubr.f32.gmra.mrb[6].mxu1 %v10007_v5  ;;  %8613 = vmatprep.subr.mxu0 %v10063_v22 }
 0x111   : > { %8209 = vmatprep.mubr.f32.mxu1 %v10722_v37 }
 0x112   : > { %8591 = vmatmul.mubr.f32.gmra.mrb[2].mxu0 %v5870_v27 }
 0x113   : > { %8593 = vmatprep.mubr.f32.mxu0 %v5880_v42  ;;  %v7454_v42 = vld [vmem:[%s9255_s25 + $0x130] sm:$0xff] }
 0x114   : > { %8210 = vmatmul.mubr.f32.vlgmr.msra.gmra.mrb[0].mxu1 %v9956_v55 }
 0x115   : > { %8222 = vmatpush3.msra.mxu1 %v9898_v24  ;;  %8212 = vmatprep.mubr.f32.mxu1 %v9965_v25  ;;  %v7461_v24 = vld [vmem:[%s10596_s1 + $0xc] sm:$0xf] }
 0x116   : > { %8594 = vmatmul.mubr.f32.gmra.mrb[4].mxu0 %v5890_v50  ;;  %8235 = vmatprep.subr.mxu1 %v9880_v35  ;;  %v2597_v63 = vsel %vm244_vm0, %v7461_v24, 0  ;;  %v2576_v50 = vsel %vm219_vm1, %v7454_v42, 0  ;;  %v7457_v24 = vld [vmem:[%s9255_s25 + $0x160] sm:$0xff] }
 0x117   : > { %8596 = vmatprep.mubr.f32.mxu0 %v5900_v8  ;;  %v10214_v33 = vand.u32 4294901760, %v2597_v63  ;;  %v2579_v8 = vsel %vm219_vm1, %v7455_v60, 0  ;;  %v2585_v34 = vsel %vm219_vm1, %v7457_v24, 0  ;;  %v2588_v24 = vsel %vm219_vm1, %v7458_v53, 0 }
 0x118   : > { %8213 = vmatmul.mubr.f32.gmra.mrb[2].mxu1 %v9979_v10  ;;  %v10258_v42 = vand.u32 4294901760, %v2579_v8  ;;  %v10293_v53 = vand.u32 4294901760, %v2588_v24 }
 0x119   : > { %8215 = vmatprep.mubr.f32.mxu1 %v9990_v61  ;;  %v10224_v27 = vsub.f32 %v2597_v63, %v10214_v33 }
 0x11a   : > { %8597 = vmatmul.mubr.f32.gmra.mrb[6].mxu0 %v5910_v28  ;;  %v7456_v28 = vld [vmem:[%s9255_s25 + $0x150] sm:$0xff] }
 0x11b   : > { %8601 = vmatprep.mubr.f32.mxu0 %v10079_v46  ;;  %v2582_v60 = vsel %vm219_vm1, %v7456_v28, 0  ;;  %v10278_v28 = vand.u32 4294901760, %v2585_v34 }
 0x11c   : > { %8216 = vmatmul.mubr.f32.gmra.mrb[4].mxu1 %v10004_v58 }
 0x11d   : > { %8218 = vmatprep.mubr.f32.mxu1 %v10015_v48  ;;  %v10298_v10 = vsub.f32 %v2585_v34, %v10278_v28  ;;  %v10312_v34 = vsub.f32 %v2588_v24, %v10293_v53  ;;  %v10727_v24 = vand.u32 4294901760, %v10115_v20 }
 0x11e   : > { %8602 = vmatmul.mubr.f32.vlgmr.msra.gmra.mrb[0].mxu0 %v10094_v32 }
 0x11f   : > { %8604 = vmatprep.mubr.f32.mxu0 %v10097_v13  ;;  %8614 = vmatpush3.msra.mxu0 %v10063_v22  ;;  %v7453_v22 = vld [vmem:[%s9255_s25 + $0x120] sm:$0xff] }
 0x120   : > { %8219 = vmatmul.mubr.f32.gmra.mrb[6].mxu1 %v10025_v17  ;;  %8627 = vmatprep.subr.mxu0 %v10053_v51  ;;  %v2573_v15 = vsel %vm219_vm1, %v7453_v22, 0  ;;  %v10255_v22 = vand.u32 4294901760, %v2576_v50  ;;  %v10271_v17 = vand.u32 4294901760, %v2582_v60 }
 0x121   : > { %8223 = vmatprep.mubr.f32.mxu1 %v9904_v36  ;;  %v10238_v37 = vand.u32 4294901760, %v2573_v15 }
 0x122   : > { %8605 = vmatmul.mubr.f32.gmra.mrb[2].mxu0 %v10110_v41  ;;  %v10291_v61 = vsub.f32 %v2582_v60, %v10271_v17 }
 0x123   : > { %8607 = vmatprep.mubr.f32.mxu0 %v10117_v45  ;;  %v10252_v63 = vsub.f32 %v2573_v15, %v10238_v37  ;;  %v7459_v15 = vld [vmem:[%s9255_s25 + $0x180] sm:$0xff] }
 0x124   : > { %8224 = vmatmul.mubr.f32.vlgmr.msra.gmra.mrb[0].mxu1 %v9921_v4  ;;  %v2591_v16 = vsel %vm219_vm1, %v7459_v15, 0  ;;  %v10672_v15 = vand.u32 4294901760, %v10291_v61 }
 0x125   : > { %8236 = vmatpush3.msra.mxu1 %v9880_v35  ;;  %8226 = vmatprep.mubr.f32.mxu1 %v9924_v59  ;;  %v10232_v35 = vand.u32 4294901760, %v10224_v27  ;;  %v10723_v48 = vand.u32 4294901760, %v10252_v63  ;;  %v10300_v25 = vand.u32 4294901760, %v2591_v16 }
 0x126   : > { %8608 = vmatmul.mubr.f32.gmra.mrb[4].mxu0 %v10132_v56  ;;  %8249 = vmatprep.subr.mxu1 %v10214_v33 }
 0x127   : > { %8610 = vmatprep.mubr.f32.mxu0 %v10139_v6  ;;  %v2749_v31 = vsub.f32 %v10224_v27, %v10232_v35  ;;  %v2668_v58 = vsub.f32 %v10252_v63, %v10723_v48  ;;  %v10724_v48 = vand.u32 4294901760, %v10092_v19  ;;  %v10322_v40 = vsub.f32 %v2591_v16, %v10300_v25 }
 0x128   : > { %8227 = vmatmul.mubr.f32.gmra.mrb[2].mxu1 %v9937_v52 }
 0x129   : > { %8229 = vmatprep.mubr.f32.mxu1 %v9944_v7  ;;  %v2750_v9 = vand.u32 4294901760, %v2749_v31  ;;  %v10276_v31 = vsub.f32 %v2579_v8, %v10258_v42 }
 0x12a   : > { %8611 = vmatmul.mubr.f32.gmra.mrb[6].mxu0 %v10154_v57 }
 0x12b   : > { %8615 = vmatprep.mubr.f32.mxu0 %v10092_v19  ;;  %v10725_v2 = vand.u32 4294901760, %v10276_v31 }
 0x12c   : > { %8230 = vmatmul.mubr.f32.gmra.mrb[4].mxu1 %v9961_v54 }
 0x12d   : > { %8232 = vmatprep.mubr.f32.mxu1 %v9970_v14  ;;  %v2688_v19 = vsub.f32 %v10276_v31, %v10725_v2  ;;  %v2698_v2 = vsub.f32 %v10291_v61, %v10672_v15 }
 0x12e   : > { %8616 = vmatmul.mubr.f32.vlgmr.msra.gmra.mrb[0].mxu0 %v10108_v0 }
 0x12f   : > { %8618 = vmatprep.mubr.f32.mxu0 %v10115_v20  ;;  %8628 = vmatpush3.msra.mxu0 %v10053_v51  ;;  %v10728_v20 = vand.u32 4294901760, %v10298_v10  ;;  %v2699_v15 = vand.u32 4294901760, %v2698_v2 }
 0x130   : > { %8233 = vmatmul.mubr.f32.gmra.mrb[6].mxu1 %v9984_v21  ;;  %8641 = vmatprep.subr.mxu0 %v10072_v11 }
 0x131   : > { %8237 = vmatprep.mubr.f32.mxu1 %v9904_v36  ;;  %v10269_v36 = vsub.f32 %v2576_v50, %v10255_v22  ;;  %v7460_v50 = vld [vmem:[%s9255_s25 + $0x190] sm:$0xff] }
 0x132   : > { %8619 = vmatmul.mubr.f32.gmra.mrb[2].mxu0 %v10130_v30  ;;  %v2594_v55 = vsel %vm219_vm1, %v7460_v50, 0  ;;  %v2669_v50 = vand.u32 4294901760, %v2668_v58 }
 0x133   : > { %8621 = vmatprep.mubr.f32.mxu0 %v10137_v29  ;;  %v10671_v8 = vand.u32 4294901760, %v10269_v36  ;;  %v10314_v5 = vand.u32 4294901760, %v2594_v55 }
 0x134   : > { %8238 = vmatmul.mubr.f32.vlgmr.msra.gmra.mrb[0].mxu1 %v9921_v4 }
 0x135   : > { %8250 = vmatpush3.msra.mxu1 %v10214_v33  ;;  %8240 = vmatprep.mubr.f32.mxu1 %v9924_v59  ;;  %v2678_v60 = vsub.f32 %v10269_v36, %v10671_v8  ;;  %v10726_v8 = vand.u32 4294901760, %v10108_v0  ;;  %v10335_v16 = vsub.f32 %v2594_v55, %v10314_v5  ;;  %v2689_v0 = vand.u32 4294901760, %v2688_v19 }
 0x136   : > { %8622 = vmatmul.mubr.f32.gmra.mrb[4].mxu0 %v10152_v26  ;;  %8263 = vmatprep.subr.mxu1 %v2750_v9 }
 0x137   : > { %8624 = vmatprep.mubr.f32.mxu0 %v10162_v18  ;;  %v2679_v58 = vand.u32 4294901760, %v2678_v60  ;;  %v10729_v60 = vand.u32 4294901760, %v10130_v30  ;;  %v10731_v30 = vand.u32 4294901760, %v10152_v26 }
 0x138   : > { %8241 = vmatmul.mubr.f32.gmra.mrb[2].mxu1 %v9937_v52 }
 0x139   : > { %8243 = vmatprep.mubr.f32.mxu1 %v9944_v7 }
 0x13a   : > { %8625 = vmatmul.mubr.f32.gmra.mrb[6].mxu0 %v10172_v43 }
 0x13b   : > { %8629 = vmatprep.mubr.f32.mxu0 %v10724_v48  ;;  %v2717_v48 = vand.u32 4294901760, %v10312_v34 }
 0x13c   : > { %8244 = vmatmul.mubr.f32.gmra.mrb[4].mxu1 %v9961_v54 }
 0x13d   : > { %8246 = vmatprep.mubr.f32.mxu1 %v9970_v14  ;;  %v2718_v55 = vsub.f32 %v10312_v34, %v2717_v48 }
 0x13e   : > { %8630 = vmatmul.mubr.f32.vlgmr.msra.gmra.mrb[0].mxu0 %v10726_v8  ;;  %v2727_v8 = vand.u32 4294901760, %v10322_v40 }
 0x13f   : > { %8632 = vmatprep.mubr.f32.mxu0 %v10727_v24  ;;  %8642 = vmatpush3.msra.mxu0 %v10072_v11  ;;  %v2708_v11 = vsub.f32 %v10298_v10, %v10728_v20  ;;  %v10730_v24 = vand.u32 4294901760, %v10137_v29  ;;  %v7506_v29 = vld [vmem:[%s10596_s1 + $0x20] sm:$0xf] }
 0x140   : > { %8247 = vmatmul.mubr.f32.gmra.mrb[6].mxu1 %v9984_v21  ;;  %8655 = vmatprep.subr.mxu0 %v10053_v51  ;;  %v2728_v20 = vsub.f32 %v10322_v40, %v2727_v8  ;;  %v6560_v26 = vsel %vm244_vm0, %v7506_v29, 0  ;;  %v10760_v29 = vld [vmem:[#allocation28_spill] sm:$0xff] }
 0x141   : > { %8251 = vmatprep.mubr.f32.mxu1 %v2669_v50  ;;  %v2737_v50 = vand.u32 4294901760, %v10335_v16  ;;  %v2709_v19 = vand.u32 4294901760, %v2708_v11  ;;  %v10733_v11 = vand.u32 4294901760, %v10172_v43 }
 0x142   : > { %8633 = vmatmul.mubr.f32.gmra.mrb[2].mxu0 %v10729_v60 }
 0x143   : > { %8635 = vmatprep.mubr.f32.mxu0 %v10730_v24  ;;  %v2738_v2 = vsub.f32 %v10335_v16, %v2737_v50  ;;  %v10368_v24 = vand.u32 4294901760, %v6560_v26 }
 0x144   : > { %8252 = vmatmul.mubr.f32.vlgmr.msra.gmra.mrb[0].mxu1 %v2679_v58  ;;  %v10732_v58 = vand.u32 4294901760, %v10162_v18 }
 0x145   : > { %8264 = vmatpush3.msra.mxu1 %v2750_v9  ;;  %8254 = vmatprep.mubr.f32.mxu1 %v2689_v0  ;;  %v2719_v9 = vand.u32 4294901760, %v2718_v55  ;;  %v2729_v0 = vand.u32 4294901760, %v2728_v20  ;;  %v2739_v60 = vand.u32 4294901760, %v2738_v2  ;;  %v10375_v18 = vsub.f32 %v6560_v26, %v10368_v24  ;;  %v10763_v26 = vld [vmem:[#allocation18_spill] sm:$0xff] }
 0x146   : > { %8636 = vmatmul.mubr.f32.gmra.mrb[4].mxu0 %v10731_v30  ;;  %8277 = vmatprep.subr.mxu1 %v10224_v27  ;;  %v10759_v30 = vld [vmem:[#allocation26_spill] sm:$0xff] }
 0x147   : > { %8638 = vmatprep.mubr.f32.mxu0 %v10732_v58  ;;  %v10382_v43 = vand.u32 4294901760, %v10375_v18 }
 0x148   : > { %8255 = vmatmul.mubr.f32.gmra.mrb[2].mxu1 %v2699_v15  ;;  %v7505_v15 = vld [vmem:[%s9255_s25 + $0x81] sm:$0xff] }
 0x149   : > { %8257 = vmatprep.mubr.f32.mxu1 %v2709_v19 }
 0x14a   : > { %8639 = vmatmul.mubr.f32.gmra.mrb[6].mxu0 %v10733_v11  ;;  %v10764_v11 = vand.u32 4294901760, %v10763_v26 }
 0x14b   : > { %8643 = vmatprep.mubr.f32.mxu0 %v10079_v46 }
 0x14c   : > { %8258 = vmatmul.mubr.f32.gmra.mrb[4].mxu1 %v2719_v9  ;;  %v10761_v9 = vld [vmem:[#allocation15_spill] sm:$0xff] }
 0x14d   : > { %8260 = vmatprep.mubr.f32.mxu1 %v2729_v0 }
 0x14e   : > { %8644 = vmatmul.mubr.f32.vlgmr.msra.gmra.mrb[0].mxu0 %v10094_v32 }
 0x14f   : > { %8646 = vmatprep.mubr.f32.mxu0 %v10097_v13  ;;  %8656 = vmatpush3.msra.mxu0 %v10053_v51  ;;  %v6712_v51 = vsub.f32 %v10375_v18, %v10382_v43 }
 0x150   : > { %8261 = vmatmul.mubr.f32.gmra.mrb[6].mxu1 %v2739_v60  ;;  %8669 = vmatprep.subr.mxu0 %v10368_v24  ;;  %v3521_v60 = vsub.f32 %v10763_v26, %v10764_v11 }
 0x151   : > { %8265 = vmatprep.mubr.f32.mxu1 %v10238_v37 }
 0x152   : > { %8647 = vmatmul.mubr.f32.gmra.mrb[2].mxu0 %v10110_v41 }
 0x153   : > { %8649 = vmatprep.mubr.f32.mxu0 %v10117_v45 }
 0x154   : > { %8266 = vmatmul.mubr.f32.vlgmr.msra.gmra.mrb[0].mxu1 %v10255_v22 }
 0x155   : > { %8278 = vmatpush3.msra.mxu1 %v10224_v27  ;;  %8268 = vmatprep.mubr.f32.mxu1 %v10258_v42  ;;  %v6713_v27 = vand.u32 4294901760, %v6712_v51 }
 0x156   : > { %8650 = vmatmul.mubr.f32.gmra.mrb[4].mxu0 %v10132_v56  ;;  %8291 = vmatprep.subr.mxu1 %v10214_v33 }
 0x157   : > { %8652 = vmatprep.mubr.f32.mxu0 %v10139_v6 }
 0x158   : > { %8269 = vmatmul.mubr.f32.gmra.mrb[2].mxu1 %v10271_v17 }
 0x159   : > { %8271 = vmatprep.mubr.f32.mxu1 %v10278_v28 }
 0x15a   : > { %8653 = vmatmul.mubr.f32.gmra.mrb[6].mxu0 %v10154_v57 }
 0x15b   : > { %8657 = vmatprep.mubr.f32.mxu0 %v10079_v46  ;;  %v6557_v46 = vsel %vm219_vm1, %v7505_v15, 0 }
 0x15c   : > { %8272 = vmatmul.mubr.f32.gmra.mrb[4].mxu1 %v10293_v53 }
 0x15d   : > { %8274 = vmatprep.mubr.f32.mxu1 %v10300_v25 }
 0x15e   : > { %8658 = vmatmul.mubr.f32.vlgmr.msra.gmra.mrb[0].mxu0 %v10094_v32  ;;  %v10411_v32 = vand.u32 4294901760, %v6557_v46 }
 0x15f   : > { %8660 = vmatprep.mubr.f32.mxu0 %v10097_v13  ;;  %8670 = vmatpush3.msra.mxu0 %v10368_v24 }
 0x160   : > { %8275 = vmatmul.mubr.f32.gmra.mrb[6].mxu1 %v10314_v5  ;;  %8683 = vmatprep.subr.mxu0 %v6713_v27 }
 0x161   : > { %8279 = vmatprep.mubr.f32.mxu1 %v10252_v63 }
 0x162   : > { %8661 = vmatmul.mubr.f32.gmra.mrb[2].mxu0 %v10110_v41  ;;  %v10418_v41 = vsub.f32 %v6557_v46, %v10411_v32 }
 0x163   : > { %8663 = vmatprep.mubr.f32.mxu0 %v10117_v45 }
 0x164   : > { %8280 = vmatmul.mubr.f32.vlgmr.msra.gmra.mrb[0].mxu1 %v10269_v36  ;;  %v6700_v13 = vand.u32 4294901760, %v10418_v41 }
 0x165   : > { %8292 = vmatpush3.msra.mxu1 %v10214_v33  ;;  %8282 = vmatprep.mubr.f32.mxu1 %v10276_v31 }
 0x166   : > { %8664 = vmatmul.mubr.f32.gmra.mrb[4].mxu0 %v10132_v56  ;;  %8305 = vmatprep.subr.mxu1 %v10232_v35  ;;  %v10743_v56 = vld [vmem:[#allocation25_spill] sm:$0xff] }
 0x167   : > { %8666 = vmatprep.mubr.f32.mxu0 %v10139_v6  ;;  %v10734_v6 = vand.u32 4294901760, %v10252_v63  ;;  %v10748_v63 = vld [vmem:[#allocation20_spill] sm:$0xff] }
 0x168   : > { %8283 = vmatmul.mubr.f32.gmra.mrb[2].mxu1 %v10291_v61 }
 0x169   : > { %8285 = vmatprep.mubr.f32.mxu1 %v10298_v10 }
 0x16a   : > { %8667 = vmatmul.mubr.f32.gmra.mrb[6].mxu0 %v10154_v57  ;;  %v10745_v57 = vld [vmem:[#allocation29_spill] sm:$0xff] }
 0x16b   : > { %8671 = vmatprep.mubr.f32.mxu0 %v9999_v23  ;;  %v6701_v23 = vsub.f32 %v10418_v41, %v6700_v13 }
 0x16c   : > { %8286 = vmatmul.mubr.f32.gmra.mrb[4].mxu1 %v10312_v34 }
 0x16d   : > { %8288 = vmatprep.mubr.f32.mxu1 %v10322_v40  ;;  %v6702_v45 = vand.u32 4294901760, %v6701_v23  ;;  %v10740_v40 = vld [vmem:[#allocation2_spill] sm:$0xff] }
 0x16e   : > { %8672 = vmatmul.mubr.f32.vlgmr.msra.gmra.mrb[0].mxu0 %v10010_v47  ;;  %v10735_v47 = vand.u32 4294901760, %v10269_v36 }
 0x16f   : > { %8674 = vmatprep.mubr.f32.mxu0 %v10020_v49  ;;  %8684 = vmatpush3.msra.mxu0 %v6713_v27  ;;  %v10736_v49 = vand.u32 4294901760, %v10276_v31  ;;  %v10767_v27 = vld [vmem:[#allocation19_spill] sm:$0xff] }
 0x170   : > { %8289 = vmatmul.mubr.f32.gmra.mrb[6].mxu1 %v10335_v16  ;;  %8697 = vmatprep.subr.mxu0 %v10375_v18  ;;  %v10768_v15 = vand.u32 4294901760, %v10767_v27 }
 0x171   : > { %8293 = vmatprep.mubr.f32.mxu1 %v10734_v6  ;;  %v3522_v6 = vand.u32 4294901760, %v3521_v60 }
 0x172   : > { %8675 = vmatmul.mubr.f32.gmra.mrb[2].mxu0 %v10028_v38  ;;  %v10737_v38 = vand.u32 4294901760, %v10291_v61  ;;  %v3531_v46 = vsub.f32 %v10767_v27, %v10768_v15 }
 0x173   : > { %8677 = vmatprep.mubr.f32.mxu0 %v10039_v62  ;;  %v10738_v62 = vand.u32 4294901760, %v10298_v10  ;;  %v10739_v10 = vld [vmem:[#allocation3_spill] sm:$0xff] }
 0x174   : > { %8294 = vmatmul.mubr.f32.vlgmr.msra.gmra.mrb[0].mxu1 %v10735_v47  ;;  %v3542_v61 = vsub.f32 %v10740_v40, %v10739_v10  ;;  %v3532_v23 = vand.u32 4294901760, %v3531_v46  ;;  %v10769_v47 = vld [vmem:[#allocation4_spill] sm:$0xff]  ;;  %v7508_v10 = vld [vmem:[%s10598_s3] ss:$0 sm:$0xff] }
 0x175   : > { %8306 = vmatpush3.msra.mxu1 %v10232_v35  ;;  %8296 = vmatprep.mubr.f32.mxu1 %v10736_v49  ;;  %v10772_v49 = vld [vmem:[#allocation9_spill] sm:$0xff] }
 0x176   : > { %8678 = vmatmul.mubr.f32.gmra.mrb[4].mxu0 %v10044_v12  ;;  %8319 = vmatprep.subr.mxu1 %v10214_v33  ;;  %v10741_v12 = vld [vmem:[#allocation21_spill] sm:$0xff] }
 0x177   : > { %8680 = vmatprep.mubr.f32.mxu0 %v10051_v1  ;;  %v3543_v1 = vand.u32 4294901760, %v3542_v61 }
 0x178   : > { %8297 = vmatmul.mubr.f32.gmra.mrb[2].mxu1 %v10737_v38  ;;  %v10775_v38 = vld [vmem:[#allocation16_spill] sm:$0xff] }
 0x179   : > { %8299 = vmatprep.mubr.f32.mxu1 %v10738_v62  ;;  %v10776_v62 = vld [vmem:[#allocation17_spill] sm:$0xff] }
 0x17a   : > { %8681 = vmatmul.mubr.f32.gmra.mrb[6].mxu0 %v6702_v45  ;;  %v10774_v45 = vld [vmem:[#allocation14_spill] sm:$0xff] }
 0x17b   : > { %8685 = vmatprep.mubr.f32.mxu0 %v9921_v4 }
 0x17c   : > { %8300 = vmatmul.mubr.f32.gmra.mrb[4].mxu1 %v2717_v48  ;;  %v10753_v48 = vld [vmem:[#allocation22_spill] sm:$0xff] }
 0x17d   : > { %8302 = vmatprep.mubr.f32.mxu1 %v2727_v8  ;;  %v10755_v8 = vld [vmem:[#allocation11_spill] sm:$0xff] }
 0x17e   : > { %8686 = vmatmul.mubr.f32.vlgmr.msra.gmra.mrb[0].mxu0 %v9924_v59  ;;  %v10756_v55 = vand.u32 4294901760, %v10755_v8 }
 0x17f   : > { %8688 = vmatprep.mubr.f32.mxu0 %v9937_v52  ;;  %8698 = vmatpush3.msra.mxu0 %v10375_v18  ;;  %v10765_v18 = vld [vmem:[#allocation30_spill] sm:$0xff] }
 0x180   : > { %8303 = vmatmul.mubr.f32.gmra.mrb[6].mxu1 %v2737_v50  ;;  %8711 = vmatprep.subr.mxu0 %v10368_v24  ;;  %v10757_v50 = vld [vmem:[#allocation13_spill] sm:$0xff] }
 0x181   : > { %8307 = vmatprep.mubr.f32.mxu1 %v10238_v37  ;;  %v10758_v19 = vand.u32 4294901760, %v10757_v50 }
 0x182   : > { %8689 = vmatmul.mubr.f32.gmra.mrb[2].mxu0 %v9944_v7 }
 0x183   : > { %8691 = vmatprep.mubr.f32.mxu0 %v9961_v54  ;;  %v3501_v20 = vsub.f32 %v10757_v50, %v10758_v19 }
 0x184   : > { %8308 = vmatmul.mubr.f32.vlgmr.msra.gmra.mrb[0].mxu1 %v10255_v22 }
 0x185   : > { %8320 = vmatpush3.msra.mxu1 %v10214_v33  ;;  %8310 = vmatprep.mubr.f32.mxu1 %v10258_v42  ;;  %v10746_v33 = vld [vmem:[#allocation6_spill] sm:$0xff]  ;;  %v3502_v0 = vand.u32 4294901760, %v3501_v20 }
 0x186   : > { %8692 = vmatmul.mubr.f32.gmra.mrb[4].mxu0 %v9970_v14  ;;  %8333 = vmatprep.subr.mxu1 %v9237_v3  ;;  %v10747_v35 = vand.u32 4294901760, %v10746_v33 }
 0x187   : > { %8694 = vmatprep.mubr.f32.mxu0 %v9984_v21 }
 0x188   : > { %8311 = vmatmul.mubr.f32.gmra.mrb[2].mxu1 %v10271_v17 }
 0x189   : > { %8313 = vmatprep.mubr.f32.mxu1 %v10278_v28 }
 0x18a   : > { %8695 = vmatmul.mubr.f32.gmra.mrb[6].mxu0 %v10411_v32 }
 0x18b   : > { %8699 = vmatprep.mubr.f32.mxu0 %v9935_v39  ;;  %v10742_v39 = vld [vmem:[#allocation23_spill] sm:$0xff] }
 0x18c   : > { %8314 = vmatmul.mubr.f32.gmra.mrb[4].mxu1 %v10293_v53 }
 0x18d   : > { %8316 = vmatprep.mubr.f32.mxu1 %v10300_v25 }
 0x18e   : > { %8700 = vmatmul.mubr.f32.vlgmr.msra.gmra.mrb[0].mxu0 %v9942_v44  ;;  %v10744_v44 = vld [vmem:[#allocation27_spill] sm:$0xff] }
 0x18f   : > { %8702 = vmatprep.mubr.f32.mxu0 %v10741_v12  ;;  %8712 = vmatpush3.msra.mxu0 %v10368_v24 }
 0x190   : > { %8317 = vmatmul.mubr.f32.gmra.mrb[6].mxu1 %v10314_v5  ;;  %8725 = vmatprep.subr.mxu0 %v10382_v43 }
 0x191   : > { %8321 = vmatprep.mubr.f32.mxu1 %v10238_v37  ;;  %v3461_v37 = vsub.f32 %v10746_v33, %v10747_v35 }
 0x192   : > { %8703 = vmatmul.mubr.f32.gmra.mrb[2].mxu0 %v10742_v39 }
 0x193   : > { %8705 = vmatprep.mubr.f32.mxu0 %v10743_v56  ;;  %v3462_v36 = vand.u32 4294901760, %v3461_v37 }
 0x194   : > { %8322 = vmatmul.mubr.f32.vlgmr.msra.gmra.mrb[0].mxu1 %v10255_v22 }
 0x195   : > { %8334 = vmatpush3.msra.mxu1 %v9237_v3  ;;  %8324 = vmatprep.mubr.f32.mxu1 %v10258_v42  ;;  %v10749_v3 = vld [vmem:[#allocation7_spill] sm:$0xff] }
 0x196   : > { %8706 = vmatmul.mubr.f32.gmra.mrb[4].mxu0 %v10744_v44  ;;  %8347 = vmatprep.subr.mxu1 %v3543_v1  ;;  %v10750_v22 = vand.u32 4294901760, %v10749_v3 }
 0x197   : > { %8708 = vmatprep.mubr.f32.mxu0 %v10745_v57 }
 0x198   : > { %8325 = vmatmul.mubr.f32.gmra.mrb[2].mxu1 %v10271_v17  ;;  %v3471_v42 = vsub.f32 %v10749_v3, %v10750_v22  ;;  %v10751_v17 = vld [vmem:[#allocation10_spill] sm:$0xff] }
 0x199   : > { %8327 = vmatprep.mubr.f32.mxu1 %v10278_v28  ;;  %v10752_v31 = vand.u32 4294901760, %v10751_v17  ;;  %v10754_v28 = vld [vmem:[#allocation24_spill] sm:$0xff] }
 0x19a   : > { %8709 = vmatmul.mubr.f32.gmra.mrb[6].mxu0 %v10418_v41  ;;  %v3472_v16 = vand.u32 4294901760, %v3471_v42  ;;  %v10770_v41 = vld [vmem:[#allocation5_spill] sm:$0xff] }
 0x19b   : > { %8713 = vmatprep.mubr.f32.mxu0 %v10748_v63  ;;  %v3481_v34 = vsub.f32 %v10751_v17, %v10752_v31 }
 0x19c   : > { %8328 = vmatmul.mubr.f32.gmra.mrb[4].mxu1 %v10293_v53  ;;  %v3491_v53 = vsub.f32 %v10755_v8, %v10756_v55 }
 0x19d   : > { %8330 = vmatprep.mubr.f32.mxu1 %v10300_v25  ;;  %v3482_v25 = vand.u32 4294901760, %v3481_v34 }
 0x19e   : > { %8714 = vmatmul.mubr.f32.vlgmr.msra.gmra.mrb[0].mxu0 %v10753_v48  ;;  %v3492_v58 = vand.u32 4294901760, %v3491_v53 }
 0x19f   : > { %8716 = vmatprep.mubr.f32.mxu0 %v10754_v28  ;;  %8726 = vmatpush3.msra.mxu0 %v10382_v43  ;;  %v10766_v43 = vld [vmem:[#allocation31_spill] sm:$0xff] }
 0x1a0   : > { %8331 = vmatmul.mubr.f32.gmra.mrb[6].mxu1 %v10314_v5  ;;  %8739 = vmatprep.subr.mxu0 %v10368_v24  ;;  %v10762_v5 = vand.u32 4294901760, %v10761_v9 }
 0x1a1   : > { %8335 = vmatprep.mubr.f32.mxu1 %v3462_v36 }
 0x1a2   : > { %8717 = vmatmul.mubr.f32.gmra.mrb[2].mxu0 %v10759_v30  ;;  %v3511_v2 = vsub.f32 %v10761_v9, %v10762_v5 }
 0x1a3   : > { %8719 = vmatprep.mubr.f32.mxu0 %v10760_v29 }
 0x1a4   : > { %8336 = vmatmul.mubr.f32.vlgmr.msra.gmra.mrb[0].mxu1 %v3472_v16  ;;  %v3512_v51 = vand.u32 4294901760, %v3511_v2 }
 0x1a5   : > { %8348 = vmatpush3.msra.mxu1 %v3543_v1  ;;  %8338 = vmatprep.mubr.f32.mxu1 %v3482_v25 }
 0x1a6   : > { %8720 = vmatmul.mubr.f32.gmra.mrb[4].mxu0 %v10765_v18  ;;  %8361 = vmatprep.subr.mxu1 %v10740_v40 }
 0x1a7   : > { %8722 = vmatprep.mubr.f32.mxu0 %v10766_v43 }
 0x1a8   : > { %8339 = vmatmul.mubr.f32.gmra.mrb[2].mxu1 %v3492_v58 }
 0x1a9   : > { %8341 = vmatprep.mubr.f32.mxu1 %v3502_v0 }
 0x1aa   : > { %8723 = vmatmul.mubr.f32.gmra.mrb[6].mxu0 %v6700_v13  ;;  %v10771_v13 = vld [vmem:[#allocation8_spill] sm:$0xff] }
 0x1ab   : > { %8727 = vmatprep.mubr.f32.mxu0 %v9921_v4 }
 0x1ac   : > { %8342 = vmatmul.mubr.f32.gmra.mrb[4].mxu1 %v3512_v51 }
 0x1ad   : > { %8344 = vmatprep.mubr.f32.mxu1 %v3522_v6 }
 0x1ae   : > { %8728 = vmatmul.mubr.f32.vlgmr.msra.gmra.mrb[0].mxu0 %v9924_v59 }
 0x1af   : > { %8730 = vmatprep.mubr.f32.mxu0 %v9937_v52  ;;  %8740 = vmatpush3.msra.mxu0 %v10368_v24  ;;  %v10773_v24 = vld [vmem:[#allocation12_spill] sm:$0xff] }
 0x1b0   : > { %8345 = vmatmul.mubr.f32.gmra.mrb[6].mxu1 %v3532_v23 }
 0x1b1   : > { %8349 = vmatprep.mubr.f32.mxu1 %v10769_v47 }
 0x1b2   : > { %8731 = vmatmul.mubr.f32.gmra.mrb[2].mxu0 %v9944_v7 }
 0x1b3   : > { %8733 = vmatprep.mubr.f32.mxu0 %v9961_v54 }
 0x1b4   : > { %8350 = vmatmul.mubr.f32.vlgmr.msra.gmra.mrb[0].mxu1 %v10770_v41 }
 0x1b5   : > { %8362 = vmatpush3.msra.mxu1 %v10740_v40  ;;  %8352 = vmatprep.mubr.f32.mxu1 %v10771_v13 }
 0x1b6   : > { %8734 = vmatmul.mubr.f32.gmra.mrb[4].mxu0 %v9970_v14 }
 0x1b7   : > { %8736 = vmatprep.mubr.f32.mxu0 %v9984_v21 }
 0x1b8   : > { %8353 = vmatmul.mubr.f32.gmra.mrb[2].mxu1 %v10772_v49 }
 0x1b9   : > { %8355 = vmatprep.mubr.f32.mxu1 %v10773_v24 }
 0x1ba   : > { %8737 = vmatmul.mubr.f32.gmra.mrb[6].mxu0 %v10411_v32 }
 0x1bb   : > { %8741 = vmatprep.mubr.f32.mxu0 %v9921_v4 }
 0x1bc   : > { %8356 = vmatmul.mubr.f32.gmra.mrb[4].mxu1 %v10774_v45 }
 0x1bd   : > { %8358 = vmatprep.mubr.f32.mxu1 %v10775_v38 }
 0x1be   : > { %8742 = vmatmul.mubr.f32.vlgmr.msra.gmra.mrb[0].mxu0 %v9924_v59 }
 0x1bf   : > { %8744 = vmatprep.mubr.f32.mxu0 %v9937_v52 }
 0x1c0   : > { %8359 = vmatmul.mubr.f32.gmra.mrb[6].mxu1 %v10776_v62 }
 0x1c1   : > { %8363 = vmatprep.mubr.f32.mxu1 %v10746_v33 }
 0x1c2   : > { %8745 = vmatmul.mubr.f32.gmra.mrb[2].mxu0 %v9944_v7 }
 0x1c3   : > { %8747 = vmatprep.mubr.f32.mxu0 %v9961_v54 }
 0x1c4   : > { %8364 = vmatmul.mubr.f32.vlgmr.msra.gmra.mrb[0].mxu1 %v10749_v3 }
 0x1c5   : > { %8366 = vmatprep.mubr.f32.mxu1 %v10751_v17 }
 0x1c6   : > { %8748 = vmatmul.mubr.f32.gmra.mrb[4].mxu0 %v9970_v14  ;;  %v7507_v14 = vld [vmem:[%s10597_s2] ss:$0 sm:$0xff] }
 0x1c7   : > { %8750 = vmatprep.mubr.f32.mxu0 %v9984_v21 }
 0x1c8   : > { %8367 = vmatmul.mubr.f32.gmra.mrb[2].mxu1 %v10755_v8 }
 0x1c9   : > { %8369 = vmatprep.mubr.f32.mxu1 %v10757_v50 }
 0x1ca   : > { %8751 = vmatmul.mubr.f32.gmra.mrb[6].mxu0 %v10411_v32 }
 0x1cc   : > { %8370 = vmatmul.mubr.f32.gmra.mrb[4].mxu1 %v10761_v9 }
 0x1cd   : > { %8372 = vmatprep.mubr.f32.mxu1 %v10763_v26 }
 0x1d0   : > { %8373 = vmatmul.mubr.f32.gmra.mrb[6].mxu1 %v10767_v27 }
 0x291   : > { %v8743_v4 = vpop.f32.mrb[0].mxu0 }
 0x292   : > { %v7263_v59 = vpop.f32.mrb[1].mxu0 }
 0x295   : > { %v8746_v52 = vpop.f32.mrb[2].mxu0 }
 0x296   : > { %v7275_v7 = vpop.f32.mrb[3].mxu0 }
 0x297   : > { %v8365_v54 = vpop.f32.mrb[0].mxu1 }
 0x298   : > { %v8753_v21 = vadd.f32 %v8743_v4, %v8365_v54  ;;  %v3726_v32 = vpop.f32.mrb[1].mxu1 }
 0x299   : > { %v8754_v40 = vadd.f32 %v7263_v59, %v3726_v32  ;;  %v8749_v61 = vpop.f32.mrb[4].mxu0 }
 0x29a   : > { %v7325_v12 = vmul.f32 %v8753_v21, %v7507_v14  ;;  %v7287_v39 = vpop.f32.mrb[5].mxu0 }
 0x29b   : > { %v7324_v1 = vmul.f32 %v8754_v40, %v7507_v14  ;;  %v8368_v56 = vpop.f32.mrb[2].mxu1 }
 0x29c   : > { %v7340_v44 = vadd.f32 %v7508_v10, %v7325_v12  ;;  %v8755_v57 = vadd.f32 %v8746_v52, %v8368_v56  ;;  %v3740_v33 = vpop.f32.mrb[3].mxu1 }
 0x29d   : > { %v7339_v35 = vadd.f32 %v7508_v10, %v7324_v1  ;;  %v8756_v37 = vadd.f32 %v7275_v7, %v3740_v33  ;;  %v8752_v63 = vpop.f32.mrb[6].mxu0 }
 0x29e   : > { %vm7348_vm2 = vcmp.gt.f32.partialorder %v7340_v44, 0.0  ;;  %v7356_v3 = vmul.f32 0.01, %v7340_v44  ;;  %v7327_v22 = vmul.f32 %v8755_v57, %v7507_v14  ;;  %v7299_v42 = vpop.f32.mrb[7].mxu0 }
 0x29f   : > { %vm7347_vm3 = vcmp.gt.f32.partialorder %v7339_v35, 0.0  ;;  %v7355_v36 = vmul.f32 0.01, %v7339_v35  ;;  %v7326_v17 = vmul.f32 %v8756_v37, %v7507_v14  ;;  %v8371_v31 = vpop.f32.mrb[4].mxu1 }
 0x2a0   : > { %v7364_v34 = vsel %vm7348_vm2, %v7340_v44, %v7356_v3  ;;  %v7342_v48 = vadd.f32 %v7508_v10, %v7327_v22  ;;  %v8757_v28 = vadd.f32 %v8749_v61, %v8371_v31  ;;  %v3754_v16 = vpop.f32.mrb[5].mxu1 }
 0x2a1   : > { %7372 = vst.msk [vmem:[%s10574_s23 + $0x8] sm:$0xff] %vm219_vm1, %v7364_v34  ;;  %v7363_v8 = vsel %vm7347_vm3, %v7339_v35, %v7355_v36  ;;  %v7341_v55 = vadd.f32 %v7508_v10, %v7326_v17  ;;  %v8758_v53 = vadd.f32 %v7287_v39, %v3754_v16 }
 0x2a2   : > { %7371 = vst.msk [vmem:[%s10574_s23] sm:$0xff] %vm219_vm1, %v7363_v8  ;;  %vm7350_vm4 = vcmp.gt.f32.partialorder %v7342_v48, 0.0  ;;  %v7358_v25 = vmul.f32 0.01, %v7342_v48  ;;  %v7329_v50 = vmul.f32 %v8757_v28, %v7507_v14 }
 0x2a3   : > { %vm7349_vm5 = vcmp.gt.f32.partialorder %v7341_v55, 0.0  ;;  %v7357_v19 = vmul.f32 0.01, %v7341_v55  ;;  %v7328_v20 = vmul.f32 %v8758_v53, %v7507_v14  ;;  %v8374_v30 = vpop.f32.mrb[6].mxu1 }
 0x2a4   : > { %v7366_v29 = vsel %vm7350_vm4, %v7342_v48, %v7358_v25  ;;  %v7344_v58 = vadd.f32 %v7508_v10, %v7329_v50  ;;  %v8759_v9 = vadd.f32 %v8752_v63, %v8374_v30  ;;  %v3768_v5 = vpop.f32.mrb[7].mxu1 }
 0x2a5   : > { %7374 = vst.msk [vmem:[%s10574_s23 + $0x18] sm:$0xff] %vm219_vm1, %v7366_v29  ;;  %v7365_v2 = vsel %vm7349_vm5, %v7341_v55, %v7357_v19  ;;  %v7343_v0 = vadd.f32 %v7508_v10, %v7328_v20  ;;  %v8760_v26 = vadd.f32 %v7299_v42, %v3768_v5 }
 0x2a6   : > { %7373 = vst.msk [vmem:[%s10574_s23 + $0x10] sm:$0xff] %vm219_vm1, %v7365_v2  ;;  %vm7352_vm6 = vcmp.gt.f32.partialorder %v7344_v58, 0.0  ;;  %v7360_v11 = vmul.f32 0.01, %v7344_v58  ;;  %v7331_v60 = vmul.f32 %v8759_v9, %v7507_v14 }
 0x2a7   : > { %vm7351_vm7 = vcmp.gt.f32.partialorder %v7343_v0, 0.0  ;;  %v7359_v18 = vmul.f32 0.01, %v7343_v0  ;;  %v7330_v43 = vmul.f32 %v8760_v26, %v7507_v14 }
 0x2a8   : > { %v7368_v51 = vsel %vm7352_vm6, %v7344_v58, %v7360_v11  ;;  %v7346_v27 = vadd.f32 %v7508_v10, %v7331_v60 }
 0x2a9   : > { %7376 = vst.msk [vmem:[%s10574_s23 + $0x28] sm:$0xff] %vm219_vm1, %v7368_v51  ;;  %v7367_v15 = vsel %vm7351_vm7, %v7343_v0, %v7359_v18  ;;  %v7345_v46 = vadd.f32 %v7508_v10, %v7330_v43 }
 0x2aa   : > { %7375 = vst.msk [vmem:[%s10574_s23 + $0x20] sm:$0xff] %vm219_vm1, %v7367_v15  ;;  %vm7354_vm8 = vcmp.gt.f32.partialorder %v7346_v27, 0.0  ;;  %v7362_v6 = vmul.f32 0.01, %v7346_v27 }
 0x2ab   : > { %vm7353_vm9 = vcmp.gt.f32.partialorder %v7345_v46, 0.0  ;;  %v7361_v23 = vmul.f32 0.01, %v7345_v46 }
 0x2ac   : > { %v7370_v47 = vsel %vm7354_vm8, %v7346_v27, %v7362_v6 }
 0x2ad   : > { %7378 = vst.msk [vmem:[%s10574_s23 + $0x38] sm:$0xff] %vm219_vm1, %v7370_v47  ;;  %v7369_v41 = vsel %vm7353_vm9, %v7345_v46, %v7361_v23 }
 0x2ae   : > { %7377 = vst.msk [vmem:[%s10574_s23 + $0x30] sm:$0xff] %vm219_vm1, %v7369_v41 }
 0x2af PF: > { %s14_s15 = sadd.s32 1, %s9192_s15  }
 0x2b0   : > { %p11_p5 = scmp.ge.s32.totalorder %s14_s15, 4  }
 0x2b2   :  { %13 = sbr.rel (!%p11_p5) target bundleno = 1 (0x1), region = 79 }

</bundles_post_ra>
